<compile_context>
chip_gen: v6e
topology: v6e:2x2x1
jax: 0.10.0
libtpu: 0.0.40
codegen_flags: <defaults>
</compile_context>

<pallas_src>
import functools

import jax
import jax.numpy as jnp
from jax.experimental import pallas as pl
from jax.experimental.pallas import tpu as pltpu

NEG = -1e30   # f32 mask sentinel; softmax math is kept in f32 on purpose.


def _rgat_kernel(x_ref, w1_ref, b1_ref, w2_ref, b2_ref, edges_ref, out_ref,
                 v_scr, q_scr, k_scr, *, n_relations, n_heads, attn_units,
                 chunked, tile_i, mode, compute_dtype):
    R, H, A, C, TI = n_relations, n_heads, attn_units, chunked, tile_i
    RH = R * H
    RHA = RH * A
    N = x_ref.shape[1]
    cd = compute_dtype
    f32 = jnp.float32
    approx = jnp.dtype(cd) != jnp.dtype(jnp.float32)

    # ---- per-batch projections: V, Q, K cached once in VMEM scratch --------
    @pl.when(pl.program_id(1) == 0)
    def _():
        x_all = x_ref[0]                                              # (N, F)
        v_flat = (jnp.dot(x_all, w1_ref[...],
                          preferred_element_type=f32)
                  + b1_ref[...])                                      # (N, RH*C) f32
        v_cd = v_flat.astype(cd)
        qk = (jnp.dot(v_cd, w2_ref[...],
                      preferred_element_type=f32)
              + b2_ref[...]).astype(cd)                               # (N, 2*RH*A)
        # One relayout per batch into the batched (RH, N, .) operand layout.
        v_scr[...] = jnp.transpose(v_cd.reshape(N, RH, C), (1, 0, 2))
        q_scr[...] = jnp.transpose(qk[:, :RHA].reshape(N, RH, A), (1, 0, 2))
        k_scr[...] = jnp.transpose(qk[:, RHA:].reshape(N, RH, A), (1, 0, 2))

    # ---- per-i-tile attention logits (batched over the (r, h) axis) --------
    i0 = pl.multiple_of(pl.program_id(1) * TI, TI)
    q_b = q_scr[:, pl.ds(i0, TI), :]                                  # (RH, TI, A)
    logits = jax.lax.dot_general(
        q_b, k_scr[...], (((2,), (2,)), ((0,), (0,))),
        preferred_element_type=f32).reshape(R, H, TI, N)              # (R,H,TI,N)

    # ---- masked softmax in f32 (dense emulation of torch.sparse.softmax) ---
    mask = edges_ref[0].astype(f32)                                   # (R, TI, N)
    masked = logits + ((1.0 - mask) * NEG)[:, None]                   # additive bias
    if mode == "wirgat":      # softmax over key node j, per (relation, head, i)
        m = jnp.max(masked, axis=-1, keepdims=True)                   # (R,H,TI,1)
        p = jnp.exp(masked - m) * mask[:, None]
        d = jnp.sum(p, axis=-1, keepdims=True)                        # (R,H,TI,1)
    else:                     # "argat": softmax jointly over (j, r), per (head, i)
        m = jnp.max(jnp.max(masked, axis=0), axis=-1, keepdims=True)  # (H,TI,1)
        p = jnp.exp(masked - m[None]) * mask[:, None]
        d = jnp.sum(jnp.sum(p, axis=-1, keepdims=True),
                    axis=0, keepdims=True)                            # (1,H,TI,1)
    # Deferred normalization: reciprocal of the tiny denominator, applied
    # after the aggregation matmul (exact for f32 validation, EUP approx for bf16).
    inv = pl.reciprocal(jnp.where(d > 0.0, d, 1.0), approx=approx)

    # ---- aggregation: out[i,h,c] = inv * sum_{r,j} p * V --------------------
    ctx = jax.lax.dot_general(
        p.reshape(RH, TI, N).astype(cd), v_scr[...],
        (((2,), (1,)), ((0,), (0,))),
        preferred_element_type=f32).reshape(R, H, TI, C)              # (R,H,TI,C)
    if mode == "wirgat":
        ctx = (ctx * inv).sum(axis=0)                                 # (H, TI, C)
    else:
        ctx = ctx.sum(axis=0) * inv[0]                                # (H, TI, C)

    # Single lane-dense store of the whole (TI, H*C) output tile.
    out_ref[0] = jnp.transpose(ctx, (1, 0, 2)).reshape(TI, H * C).astype(out_ref.dtype)


def _round_up(x, m):
    return (x + m - 1) // m * m


def _tile_bytes(rows, cols, itemsize, sublane=8):
    """Padded VMEM footprint of a 2-D (rows, cols) tile."""
    return _round_up(max(rows, 1), sublane) * _round_up(max(cols, 1), 128) * itemsize


def _vmem_cap_bytes():
    try:
        return int(pltpu.get_tpu_info().vmem_capacity_bytes)
    except Exception:   # conservative fallback (v5e/v6e physical VMEM)
        return 128 * 2 ** 20


def _vmem_limit_bytes(N, F, TI, R, H, A, C, x_dtype, w_dtype, compute_dtype):
    RH = R * H
    xs = jnp.dtype(x_dtype).itemsize
    ws = jnp.dtype(w_dtype).itemsize
    cs = jnp.dtype(compute_dtype).itemsize
    footprint = (
        _tile_bytes(N, F, xs)                                # x block
        + _tile_bytes(F, RH * C, ws)                         # W1
        + _tile_bytes(RH * C, 2 * RH * A, ws)                # W2qk (merged)
        + _tile_bytes(1, RH * C, 4) + _tile_bytes(1, 2 * RH * A, 4)   # biases
        + 2 * R * _tile_bytes(TI, N, 1, sublane=32)          # int8 edges (x2 buf)
        + 2 * _tile_bytes(TI, H * C, 4)                      # output (x2 buf)
        + RH * _tile_bytes(N, C, cs)                         # V scratch
        + 2 * RH * _tile_bytes(N, A, cs)                     # Q / K scratch
        + 5 * RH * _tile_bytes(TI, N, 4)                     # softmax temporaries
    )
    cap = _vmem_cap_bytes()
    ceiling = int(cap * 0.82)     # ~52 MiB on v7x, ~105 MiB on v5e/v6e
    return int(min(ceiling, max(32 * 2 ** 20, 2 * footprint)))


def rgat_forward(node_states, edges_bool, params, *, n_relations, n_heads,
                 attn_units, chunked, mode, tile_i=None,
                 compute_dtype=jnp.float32):
    B, N, F = node_states.shape
    R, H, A, C = n_relations, n_heads, attn_units, chunked
    RH = R * H
    w1_flat, b1_flat, w2qk_flat, b2qk_flat = params

    TI = N if tile_i is None else min(tile_i, N)
    assert N % TI == 0, "query tile must divide node count"
    grid = (B, N // TI)

    # Relation-major int8 edge mask: 4x less HBM traffic / VMEM than f32.
    edges_i8 = jnp.transpose(edges_bool, (0, 3, 1, 2)).astype(jnp.int8)  # (B,R,N,N)

    # bf16 path: cast the MXU operands (weights + node states) on the host so
    # HBM->VMEM DMA and VMEM residency halve; biases stay f32 (added into the
    # f32 matmul accumulators), softmax math stays f32 inside the kernel.
    if jnp.dtype(compute_dtype) != jnp.dtype(jnp.float32):
        w1_flat = w1_flat.astype(compute_dtype)
        w2qk_flat = w2qk_flat.astype(compute_dtype)
        node_states = node_states.astype(compute_dtype)

    vmem_limit = _vmem_limit_bytes(N, F, TI, R, H, A, C, node_states.dtype,
                                   w1_flat.dtype, compute_dtype)

    kernel = functools.partial(
        _rgat_kernel, n_relations=R, n_heads=H, attn_units=A, chunked=C,
        tile_i=TI, mode=mode, compute_dtype=compute_dtype)

    # TODO(synk): set pipeline_mode=pl.Buffered(1) on the grid-invariant
    # weight/bias specs once verified supported, to drop their dead second
    # pipeline buffer (matters under v7x's 64 MiB VMEM).
    return pl.pallas_call(
        kernel,
        out_shape=jax.ShapeDtypeStruct((B, N, H * C), jnp.float32),
        grid=grid,
        in_specs=[
            pl.BlockSpec((1, N, F), lambda b, it: (b, 0, 0)),           # x (all nodes)
            pl.BlockSpec((F, RH * C), lambda b, it: (0, 0)),            # W1 (invariant)
            pl.BlockSpec((1, RH * C), lambda b, it: (0, 0)),            # b1
            pl.BlockSpec((RH * C, 2 * RH * A), lambda b, it: (0, 0)),   # W2qk (merged)
            pl.BlockSpec((1, 2 * RH * A), lambda b, it: (0, 0)),        # b2qk
            pl.BlockSpec((1, R, TI, N), lambda b, it: (b, 0, it, 0)),   # int8 edges
        ],
        out_specs=pl.BlockSpec((1, TI, H * C), lambda b, it: (b, it, 0)),
        scratch_shapes=[
            pltpu.VMEM((RH, N, C), compute_dtype),   # cached V (batched layout)
            pltpu.VMEM((RH, N, A), compute_dtype),   # cached Q
            pltpu.VMEM((RH, N, A), compute_dtype),   # cached K
        ],
        compiler_params=pltpu.CompilerParams(
            # scratch carries per-batch state across i-steps -> "arbitrary";
            # batch stays "parallel" so v7x's 2 TensorCores split batches.
            dimension_semantics=("parallel", "arbitrary"),
            vmem_limit_bytes=vmem_limit),
    )(node_states, w1_flat, b1_flat, w2qk_flat, b2qk_flat, edges_i8)


def init_params(key, F, A, out_features, H, R, n_bases):
    """Deterministic synthetic BasisLinear parameters (basis decomposition)."""
    C = out_features // H
    ks = jax.random.split(key, 6)
    proj_bases = jax.random.normal(ks[0], (n_bases, F, C), jnp.float32) * 0.1
    proj_coeff = jax.random.normal(ks[1], (R, H, n_bases), jnp.float32)
    proj_bias = jax.random.normal(ks[2], (R, H, C), jnp.float32) * 0.1
    qk_bases = jax.random.normal(ks[3], (n_bases, R, H, C, 2 * A), jnp.float32) * 0.1
    qk_coeff = jax.random.normal(ks[4], (R, H, n_bases), jnp.float32)
    qk_bias = jax.random.normal(ks[5], (R, H, 2 * A), jnp.float32) * 0.1
    W1 = jnp.einsum('rhb,bfc->rhfc', proj_coeff, proj_bases)           # (R,H,F,C)
    W2 = jnp.einsum('rhb,bstco->rhstco', qk_coeff, qk_bases)           # (R,H,R,H,C,2A)
    return W1, proj_bias, W2, qk_bias


def flatten_params(W1, b1, W2, b2, A):
    """Pre-flatten BasisLinear weights into the kernel's 2-D matmul layout."""
    R, H, F, C = W1.shape
    RH = R * H
    W1_flat = jnp.transpose(W1, (2, 0, 1, 3)).reshape(F, RH * C)
    b1_flat = b1.reshape(1, RH * C)
    # Merged [Q | K] second projection -> one per-batch matmul in the kernel.
    W2q = jnp.transpose(W2[..., :A], (2, 3, 4, 0, 1, 5)).reshape(RH * C, RH * A)
    W2k = jnp.transpose(W2[..., A:], (2, 3, 4, 0, 1, 5)).reshape(RH * C, RH * A)
    W2qk_flat = jnp.concatenate([W2q, W2k], axis=1)                    # (RH*C, 2*RH*A)
    b2qk_flat = jnp.concatenate([b2[..., :A].reshape(1, RH * A),
                                 b2[..., A:].reshape(1, RH * A)], axis=1)
    return W1_flat, b1_flat, W2qk_flat, b2qk_flat


def rgat_reference(x, edges_bool, W1, b1, W2, b2, A, mode):
    """Pure-JAX dense reference with identical masking semantics."""
    P = jax.lax.Precision.HIGHEST
    V = jnp.einsum('bnf,rhfc->bnrhc', x, W1, precision=P) + b1
    QK = jnp.einsum('bnstc,rhstco->bnrho', V, W2, precision=P) + b2
    Q, K = QK[..., :A], QK[..., A:]
    logits = jnp.einsum('birha,bjrha->bijrh', Q, K, precision=P)       # (B,N,N,R,H)
    mask = edges_bool[..., None]
    ml = jnp.where(mask, logits, NEG)
    if mode == "wirgat":
        m = jnp.max(ml, axis=2, keepdims=True)
        p = jnp.where(mask, jnp.exp(ml - m), 0.0)
        d = jnp.sum(p, axis=2, keepdims=True)
    else:
        m = jnp.max(ml, axis=(2, 3), keepdims=True)
        p = jnp.where(mask, jnp.exp(ml - m), 0.0)
        d = jnp.sum(p, axis=(2, 3), keepdims=True)
    attn = p / jnp.where(d > 0.0, d, 1.0)
    out = jnp.einsum('bijrh,bjrhc->bihc', attn, V, precision=P)
    B, N = x.shape[:2]
    return out.reshape(B, N, -1)


if __name__ == "__main__":
    B, N, F = 2, 16, 16         # batch, nodes, in_features
    A = 8                       # attention_units
    out_features = 16
    H = 2                       # n_heads
    R = 3                       # n_relations
    n_bases = 2
    C = out_features // H       # chunked_features

    key = jax.random.PRNGKey(0)
    k_param, k_x, k_e = jax.random.split(key, 3)
    W1, b1, W2, b2 = init_params(k_param, F, A, out_features, H, R, n_bases)
    node_states = jax.random.normal(k_x, (B, N, F), jnp.float32)
    edges_bool = jax.random.bernoulli(k_e, 0.4, (B, N, N, R))

    params = flatten_params(W1, b1, W2, b2, A)

    # f32 compute, both attention modes, tight tolerance.  tile_i=8 makes the
    # i-grid multi-step so the per-batch V/Q/K scratch caching path is tested.
    for mode in ("wirgat", "argat"):
        for ti in (None, 8):
            out = rgat_forward(node_states, edges_bool, params,
                               n_relations=R, n_heads=H, attn_units=A,
                               chunked=C, mode=mode, tile_i=ti)
            out = jax.block_until_ready(out)
            ref = rgat_reference(node_states, edges_bool, W1, b1, W2, b2, A, mode)
            assert out.shape == (B, N, out_features)
            err = float(jnp.max(jnp.abs(out - ref)))
            assert jnp.allclose(out, ref, rtol=2e-3, atol=2e-3), (mode, ti, err)

    # bf16 matmul operands (host-cast weights/states) with f32 accumulation;
    # validated against the f32 reference with a looser tolerance.
    out_bf16 = rgat_forward(node_states, edges_bool, params,
                            n_relations=R, n_heads=H, attn_units=A, chunked=C,
                            mode="wirgat", tile_i=8,
                            compute_dtype=jnp.bfloat16)
    out_bf16 = jax.block_until_ready(out_bf16)
    ref = rgat_reference(node_states, edges_bool, W1, b1, W2, b2, A, "wirgat")
    assert bool(jnp.all(jnp.isfinite(out_bf16)))
    assert jnp.allclose(out_bf16, ref, rtol=1e-1, atol=1e-1)

    print("KERNEL_OK")
</pallas_src>

<mosaic_0001>
module attributes {stable_mosaic.version = 11 : i64} {
  func.func @_rgat_kernel(%arg0: i32, %arg1: i32, %arg2: memref<1x16x16xf32, #tpu.memory_space<vmem>>, %arg3: memref<16x48xf32, #tpu.memory_space<vmem>>, %arg4: memref<1x48xf32, #tpu.memory_space<vmem>>, %arg5: memref<48x96xf32, #tpu.memory_space<vmem>>, %arg6: memref<1x96xf32, #tpu.memory_space<vmem>>, %arg7: memref<1x3x16x16xi8, #tpu.memory_space<vmem>>, %arg8: memref<1x16x16xf32, #tpu.memory_space<vmem>>, %arg9: memref<6x16x8xf32, #tpu.memory_space<vmem>>, %arg10: memref<6x16x8xf32, #tpu.memory_space<vmem>>, %arg11: memref<6x16x8xf32, #tpu.memory_space<vmem>>) attributes {dimension_semantics = [#tpu.dimension_semantics<parallel>, #tpu.dimension_semantics<arbitrary>], iteration_bounds = array<i64: 2, 1>, scalar_prefetch = 0 : i64, scratch_operands = 3 : i64, tpu.core_type = #tpu.core_type<tc>, window_params = [{transform_indices = @transform_0, window_bounds = array<i64: 1, 16, 16>}, {pipeline_mode = #tpu.pipeline_mode<synchronous>, transform_indices = @transform_1, window_bounds = array<i64: 16, 48>}, {pipeline_mode = #tpu.pipeline_mode<synchronous>, transform_indices = @transform_2, window_bounds = array<i64: 1, 48>}, {pipeline_mode = #tpu.pipeline_mode<synchronous>, transform_indices = @transform_3, window_bounds = array<i64: 48, 96>}, {pipeline_mode = #tpu.pipeline_mode<synchronous>, transform_indices = @transform_4, window_bounds = array<i64: 1, 96>}, {transform_indices = @transform_5, window_bounds = array<i64: 1, 3, 16, 16>}, {transform_indices = @transform_6, window_bounds = array<i64: 1, 16, 16>}]} {
    %c0_i32 = arith.constant 0 : i32
    %0 = arith.cmpi eq, %arg1, %c0_i32 : i32
    %1 = arith.extui %0 : i1 to i32
    %c0_i32_0 = arith.constant 0 : i32
    %2 = arith.cmpi ne, %1, %c0_i32_0 : i32
    scf.if %2 {
      %c0_23 = arith.constant 0 : index
      %c0_24 = arith.constant 0 : index
      %c0_25 = arith.constant 0 : index
      %47 = vector.load %arg2[%c0_23, %c0_24, %c0_25] : memref<1x16x16xf32, #tpu.memory_space<vmem>>, vector<1x16x16xf32>
      %48 = vector.shape_cast %47 : vector<1x16x16xf32> to vector<16x16xf32>
      %c0_26 = arith.constant 0 : index
      %c0_27 = arith.constant 0 : index
      %49 = vector.load %arg3[%c0_26, %c0_27] : memref<16x48xf32, #tpu.memory_space<vmem>>, vector<16x48xf32>
      %cst_28 = arith.constant dense<0.000000e+00> : vector<16x48xf32>
      %50 = tpu.matmul %48, %49, %cst_28 {dimension_numbers = #tpu.dot_dimension_numbers<[1], [0], [0], [1], [0, 0, 1, 1], [], []>} : vector<16x16xf32>, vector<16x48xf32>, vector<16x48xf32> -> vector<16x48xf32>
      %c0_29 = arith.constant 0 : index
      %c0_30 = arith.constant 0 : index
      %51 = vector.load %arg4[%c0_29, %c0_30] : memref<1x48xf32, #tpu.memory_space<vmem>>, vector<1x48xf32>
      %52 = vector.broadcast %51 : vector<1x48xf32> to vector<16x48xf32>
      %53 = arith.addf %50, %52 : vector<16x48xf32>
      %c0_31 = arith.constant 0 : index
      %c0_32 = arith.constant 0 : index
      %54 = vector.load %arg5[%c0_31, %c0_32] : memref<48x96xf32, #tpu.memory_space<vmem>>, vector<48x96xf32>
      %cst_33 = arith.constant dense<0.000000e+00> : vector<16x96xf32>
      %55 = tpu.matmul %53, %54, %cst_33 {dimension_numbers = #tpu.dot_dimension_numbers<[1], [0], [0], [1], [0, 0, 1, 1], [], []>} : vector<16x48xf32>, vector<48x96xf32>, vector<16x96xf32> -> vector<16x96xf32>
      %c0_34 = arith.constant 0 : index
      %c0_35 = arith.constant 0 : index
      %56 = vector.load %arg6[%c0_34, %c0_35] : memref<1x96xf32, #tpu.memory_space<vmem>>, vector<1x96xf32>
      %57 = vector.broadcast %56 : vector<1x96xf32> to vector<16x96xf32>
      %58 = arith.addf %55, %57 : vector<16x96xf32>
      %59 = vector.shape_cast %53 : vector<16x48xf32> to vector<16x6x8xf32>
      %60 = tpu.transpose %59, [1, 0, 2] : vector<16x6x8xf32> -> vector<6x16x8xf32>
      %c0_36 = arith.constant 0 : index
      %c0_37 = arith.constant 0 : index
      %c0_38 = arith.constant 0 : index
      %61 = vector.load %arg9[%c0_36, %c0_37, %c0_38] : memref<6x16x8xf32, #tpu.memory_space<vmem>>, vector<6x16x8xf32>
      tpu.vector_store %arg9[%c0_36, %c0_37, %c0_38], %60 {strides = array<i32>} : memref<6x16x8xf32, #tpu.memory_space<vmem>>, vector<6x16x8xf32>,
      %62 = vector.extract_strided_slice %58 {offsets = [0, 0], sizes = [16, 48], strides = [1, 1]} : vector<16x96xf32> to vector<16x48xf32>
      %63 = vector.shape_cast %62 : vector<16x48xf32> to vector<16x6x8xf32>
      %64 = tpu.transpose %63, [1, 0, 2] : vector<16x6x8xf32> -> vector<6x16x8xf32>
      %c0_39 = arith.constant 0 : index
      %c0_40 = arith.constant 0 : index
      %c0_41 = arith.constant 0 : index
      %65 = vector.load %arg10[%c0_39, %c0_40, %c0_41] : memref<6x16x8xf32, #tpu.memory_space<vmem>>, vector<6x16x8xf32>
      tpu.vector_store %arg10[%c0_39, %c0_40, %c0_41], %64 {strides = array<i32>} : memref<6x16x8xf32, #tpu.memory_space<vmem>>, vector<6x16x8xf32>,
      %66 = vector.extract_strided_slice %58 {offsets = [0, 48], sizes = [16, 48], strides = [1, 1]} : vector<16x96xf32> to vector<16x48xf32>
      %67 = vector.shape_cast %66 : vector<16x48xf32> to vector<16x6x8xf32>
      %68 = tpu.transpose %67, [1, 0, 2] : vector<16x6x8xf32> -> vector<6x16x8xf32>
      %c0_42 = arith.constant 0 : index
      %c0_43 = arith.constant 0 : index
      %c0_44 = arith.constant 0 : index
      %69 = vector.load %arg11[%c0_42, %c0_43, %c0_44] : memref<6x16x8xf32, #tpu.memory_space<vmem>>, vector<6x16x8xf32>
      tpu.vector_store %arg11[%c0_42, %c0_43, %c0_44], %68 {strides = array<i32>} : memref<6x16x8xf32, #tpu.memory_space<vmem>>, vector<6x16x8xf32>,
    } else {
    }
    %c16_i32 = arith.constant 16 : i32
    %3 = arith.muli %arg1, %c16_i32 : i32
    %4 = tpu.assume_multiple %3, 16 : i32
    %c0 = arith.constant 0 : index
    %5 = arith.index_cast %4 : i32 to index
    %c0_1 = arith.constant 0 : index
    %6 = vector.load %arg10[%c0, %5, %c0_1] : memref<6x16x8xf32, #tpu.memory_space<vmem>>, vector<6x16x8xf32>
    %c0_2 = arith.constant 0 : index
    %c0_3 = arith.constant 0 : index
    %c0_4 = arith.constant 0 : index
    %7 = vector.load %arg11[%c0_2, %c0_3, %c0_4] : memref<6x16x8xf32, #tpu.memory_space<vmem>>, vector<6x16x8xf32>
    %cst = arith.constant dense<0.000000e+00> : vector<6x16x16xf32>
    %8 = tpu.matmul %6, %7, %cst {dimension_numbers = #tpu.dot_dimension_numbers<[2], [2], [1], [1], [0, 0, 0, 1, 1, 1], [0], [0]>} : vector<6x16x8xf32>, vector<6x16x8xf32>, vector<6x16x16xf32> -> vector<6x16x16xf32>
    %9 = vector.shape_cast %8 : vector<6x16x16xf32> to vector<3x2x16x16xf32>
    %c0_5 = arith.constant 0 : index
    %c0_6 = arith.constant 0 : index
    %c0_7 = arith.constant 0 : index
    %c0_8 = arith.constant 0 : index
    %10 = vector.load %arg7[%c0_5, %c0_6, %c0_7, %c0_8] : memref<1x3x16x16xi8, #tpu.memory_space<vmem>>, vector<1x3x16x16xi8>
    %11 = vector.shape_cast %10 : vector<1x3x16x16xi8> to vector<3x16x16xi8>
    %12 = arith.sitofp %11 : vector<3x16x16xi8> to vector<3x16x16xf32>
    %cst_9 = arith.constant 1.000000e+00 : f32
    %13 = vector.broadcast %cst_9 : f32 to vector<3x16x16xf32>
    %14 = arith.subf %13, %12 : vector<3x16x16xf32>
    %cst_10 = arith.constant -1.000000e+30 : f32
    %15 = vector.broadcast %cst_10 : f32 to vector<3x16x16xf32>
    %16 = arith.mulf %14, %15 : vector<3x16x16xf32>
    %17 = vector.shape_cast %16 : vector<3x16x16xf32> to vector<3x1x16x16xf32>
    %18 = vector.broadcast %17 : vector<3x1x16x16xf32> to vector<3x2x16x16xf32>
    %19 = arith.addf %9, %18 : vector<3x2x16x16xf32>
    %cst_11 = arith.constant dense<0xFF800000> : vector<3x2x16xf32>
    %20 = vector.multi_reduction <maximumf>, %19, %cst_11 [3] : vector<3x2x16x16xf32> to vector<3x2x16xf32>
    %21 = vector.shape_cast %20 : vector<3x2x16xf32> to vector<3x2x16x1xf32>
    %22 = vector.broadcast %21 : vector<3x2x16x1xf32> to vector<3x2x16x16xf32>
    %23 = arith.subf %19, %22 : vector<3x2x16x16xf32>
    %24 = math.exp %23 : vector<3x2x16x16xf32>
    %25 = vector.shape_cast %12 : vector<3x16x16xf32> to vector<3x1x16x16xf32>
    %26 = vector.broadcast %25 : vector<3x1x16x16xf32> to vector<3x2x16x16xf32>
    %27 = arith.mulf %24, %26 : vector<3x2x16x16xf32>
    %cst_12 = arith.constant dense<0.000000e+00> : vector<3x2x16xf32>
    %28 = vector.multi_reduction <add>, %27, %cst_12 [3] : vector<3x2x16x16xf32> to vector<3x2x16xf32>
    %29 = vector.shape_cast %28 : vector<3x2x16xf32> to vector<3x2x16x1xf32>
    %cst_13 = arith.constant 0.000000e+00 : f32
    %30 = vector.broadcast %cst_13 : f32 to vector<3x2x16x1xf32>
    %31 = arith.cmpf ogt, %29, %30 : vector<3x2x16x1xf32>
    %cst_14 = arith.constant 1.000000e+00 : f32
    %32 = vector.broadcast %cst_14 : f32 to vector<3x2x16x1xf32>
    %33 = arith.select %31, %29, %32 : vector<3x2x16x1xi1>, vector<3x2x16x1xf32>
    %34 = tpu.reciprocal %33 : vector<3x2x16x1xf32> -> vector<3x2x16x1xf32>
    %35 = vector.shape_cast %27 : vector<3x2x16x16xf32> to vector<6x16x16xf32>
    %c0_15 = arith.constant 0 : index
    %c0_16 = arith.constant 0 : index
    %c0_17 = arith.constant 0 : index
    %36 = vector.load %arg9[%c0_15, %c0_16, %c0_17] : memref<6x16x8xf32, #tpu.memory_space<vmem>>, vector<6x16x8xf32>
    %cst_18 = arith.constant dense<0.000000e+00> : vector<6x16x8xf32>
    %37 = tpu.matmul %35, %36, %cst_18 {dimension_numbers = #tpu.dot_dimension_numbers<[2], [1], [1], [2], [0, 0, 0, 1, 1, 2], [0], [0]>} : vector<6x16x16xf32>, vector<6x16x8xf32>, vector<6x16x8xf32> -> vector<6x16x8xf32>
    %38 = vector.shape_cast %37 : vector<6x16x8xf32> to vector<3x2x16x8xf32>
    %39 = vector.broadcast %34 : vector<3x2x16x1xf32> to vector<3x2x16x8xf32>
    %40 = arith.mulf %38, %39 : vector<3x2x16x8xf32>
    %cst_19 = arith.constant dense<0.000000e+00> : vector<2x16x8xf32>
    %41 = vector.multi_reduction <add>, %40, %cst_19 [0] : vector<3x2x16x8xf32> to vector<2x16x8xf32>
    %42 = tpu.transpose %41, [1, 0, 2] : vector<2x16x8xf32> -> vector<16x2x8xf32>
    %43 = vector.shape_cast %42 : vector<16x2x8xf32> to vector<16x16xf32>
    %c0_20 = arith.constant 0 : index
    %c0_21 = arith.constant 0 : index
    %c0_22 = arith.constant 0 : index
    %44 = vector.load %arg8[%c0_20, %c0_21, %c0_22] : memref<1x16x16xf32, #tpu.memory_space<vmem>>, vector<1x16x16xf32>
    %45 = vector.shape_cast %44 : vector<1x16x16xf32> to vector<16x16xf32>
    %46 = vector.shape_cast %43 : vector<16x16xf32> to vector<1x16x16xf32>
    tpu.vector_store %arg8[%c0_20, %c0_21, %c0_22], %46 {strides = array<i32>} : memref<1x16x16xf32, #tpu.memory_space<vmem>>, vector<1x16x16xf32>,
    return
  }
  func.func @transform_0(%arg0: i32, %arg1: i32) -> (i32, i32, i32) {
    %c0_i32 = arith.constant 0 : i32
    %c0_i32_0 = arith.constant 0 : i32
    %c0_i32_1 = arith.constant 0 : i32
    return %arg0, %c0_i32, %c0_i32_0 : i32, i32, i32
  }
  func.func @transform_1(%arg0: i32, %arg1: i32) -> (i32, i32) {
    %c0_i32 = arith.constant 0 : i32
    %c0_i32_0 = arith.constant 0 : i32
    %c0_i32_1 = arith.constant 0 : i32
    return %c0_i32, %c0_i32_0 : i32, i32
  }
  func.func @transform_2(%arg0: i32, %arg1: i32) -> (i32, i32) {
    %c0_i32 = arith.constant 0 : i32
    %c0_i32_0 = arith.constant 0 : i32
    %c0_i32_1 = arith.constant 0 : i32
    return %c0_i32, %c0_i32_0 : i32, i32
  }
  func.func @transform_3(%arg0: i32, %arg1: i32) -> (i32, i32) {
    %c0_i32 = arith.constant 0 : i32
    %c0_i32_0 = arith.constant 0 : i32
    %c0_i32_1 = arith.constant 0 : i32
    return %c0_i32, %c0_i32_0 : i32, i32
  }
  func.func @transform_4(%arg0: i32, %arg1: i32) -> (i32, i32) {
    %c0_i32 = arith.constant 0 : i32
    %c0_i32_0 = arith.constant 0 : i32
    %c0_i32_1 = arith.constant 0 : i32
    return %c0_i32, %c0_i32_0 : i32, i32
  }
  func.func @transform_5(%arg0: i32, %arg1: i32) -> (i32, i32, i32, i32) {
    %c0_i32 = arith.constant 0 : i32
    %c0_i32_0 = arith.constant 0 : i32
    %c0_i32_1 = arith.constant 0 : i32
    return %arg0, %c0_i32, %arg1, %c0_i32_0 : i32, i32, i32, i32
  }
  func.func @transform_6(%arg0: i32, %arg1: i32) -> (i32, i32, i32) {
    %c0_i32 = arith.constant 0 : i32
    %c0_i32_0 = arith.constant 0 : i32
    return %arg0, %arg1, %c0_i32 : i32, i32, i32
  }
}

</mosaic_0001>

<bundles_post_ra>
// kernel: tpu_custom_call.1
= control target key start
LH: loop header
LB: loop body
LE: loop exit
PB: predicated region body
PF: predicated region fallthrough
CT: control target
= control target key end

     0   :  { %s5308_s0 = inlined_call_operand.hbm [shape: f32[2,16,16], index: 0, kind: input, shape index: {}]   ;;  %s5309_s1 = inlined_call_operand.hbm [shape: f32[16,48], index: 1, kind: input, shape index: {}]   ;;  %s5310_s2 = inlined_call_operand.vmem [shape: f32[1,48], index: 2, kind: input, shape index: {}]   ;;  %s5311_s3 = inlined_call_operand.hbm [shape: f32[48,96], index: 3, kind: input, shape index: {}]   ;;  %s5312_s4 = inlined_call_operand.vmem [shape: f32[1,96], index: 4, kind: input, shape index: {}]   ;;  %s5313_s5 = inlined_call_operand.hbm [shape: s8[2,3,16,16], index: 5, kind: input, shape index: {}]   ;;  %s5314_s6 = inlined_call_operand.hbm [shape: f32[2,16,16], index: 6, kind: output, shape index: {}]  }
   0x1   :  { %5321 = sst [smem:[#allocation22_spill]] %s5308_s0 }
   0x2   :  { %5322 = sst [smem:[#allocation23_spill]] %s5309_s1 }
   0x3   :  { %5323 = sst [smem:[#allocation24_spill]] %s5311_s3 }
   0x4   :  { %11 = vsyncpa [#allocation6], 0 }
   0x5   :  { %13 = vsyncpa [#allocation6 + $0x1], 0 }
   0x6   :  { %14 = vsyncpa [#allocation9], 0 }
   0x7   :  { %15 = vsyncpa [#allocation12], 0 }
   0x8   :  { %17 = vsyncpa [#allocation12 + $0x1], 0 }
   0x9   :  { %18 = vsyncpa [#allocation7], 0 }
   0xa   :  { %20 = vsyncpa [#allocation7 + $0x1], 0  ;;  %s4570_s21 = smov 0   ;;  %s4572_s22 = smov 0  }
   0xb   :  { %s4574_s23 = smov 0   ;;  %s4576_s24 = smov 0  }
   0xc   :  { %s4578_s25 = smov 0   ;;  %s4580_s26 = smov 0  }
   0xd LB: > { %5324 = sst [smem:[#allocation18_spill]] %s4501_s23  ;;  %s3867_s27 = sadd.s32 4294967295, %s4513_s26   ;;  %s4513_s26 = sphi %s4580_s26, %s26_s26   ;;  %s4509_s25 = sphi %s4578_s25, %s5351_s25   ;;  %s4505_s24 = sphi %s4576_s24, %s5350_s24   ;;  %s4501_s23 = sphi %s4574_s23, %s5346_s23   ;;  %s4497_s22 = sphi %s4572_s22, %s5349_s22   ;;  %s4493_s21 = sphi %s4570_s21, %s5348_s21  }
   0xe   : > { %5325 = sst [smem:[#allocation19_spill]] %s4513_s26  ;;  %s3868_s28 = sadd.s32 4294967294, %s4513_s26  }
   0xf   : > { %p52_p0 = scmp.ne.s32.totalorder %s4501_s23, %s4497_s22  ;;  %p53_p1 = scmp.eq.s32.totalorder %s4513_s26, 0 }
  0x10   : > { %p58_p2 = scmp.ne.s32.totalorder %s4497_s22, %s4493_s21  ;;  %p4608_p3 = scmp.eq.s32.totalorder %s3867_s27, 0 }
  0x11   : > { %p196_p4 = scmp.eq.s32.totalorder %s3867_s27, 1  ;;  %p4612_p5 = por %p53_p1, %p52_p0 }
  0x12   : > { %p202_p6 = scmp.eq.s32.totalorder %s3868_s28, 1  ;;  %p4618_p7 = por %p4608_p3, %p58_p2 }
  0x13   : > { %p4622_p8 = por %p196_p4, %p52_p0  ;;  %p3869_p10 = scmp.ge.s32.totalorder %s4513_s26, 1 }
  0x14   : > { %p4626_p9 = por %p202_p6, %p58_p2  ;;  %p209_p11 = scmp.lt.s32.totalorder %s4513_s26, 3 }
  0x15   : > { %s4515_s12 = smov [#allocation8]   ;;  %s4516_s15 = smov [#allocation10]  }
  0x16   : > { %s5330_s10 = scalar_select %p4626_p9, 1, 0 }
  0x17   : > { %p4632_p12 = pnand %p3869_p10, %p209_p11  ;;  %s221_s13 = sshll.u32 %s4515_s12, 4  ;;  %s222_s13 = int_to_ptr.vmem [resolvable:$true] %s221_s13 }
  0x18   : > { %s237_s16 = sshll.u32 %s4516_s15, 4  ;;  %s38_s17 = sadd.s32 1, %s4509_s25  ;;  %s238_s16 = int_to_ptr.vmem [resolvable:$true] %s237_s16 }
  0x19   : > { %p4180_p13 = pneg %p4632_p12  ;;  %s4328_s18 = scalar_lea.vmem %s222_s13, 256 }
  0x1a   : > { %p4329_p4 = scmp.ne.s32.totalorder %s222_s13, %s4328_s18  ;;  %p4336_p11 = scmp.lt.s32.totalorder %s222_s13, %s222_s13 }
  0x1b   : > { %p4641_p1 = pnand %p4180_p13, %p4608_p3  ;;  %p4337_p0 = scmp.lt.s32.totalorder %s4328_s18, %s4328_s18 }
  0x1d   : > { %p4319_p2 = pneg %p4641_p1  ;;  %p4338_p13 = por %p4337_p0, %p4336_p11 }
  0x1f   : > { %p4331_p6 = pnand %p4329_p4, %p4319_p2 }
  0x21   : > { %p4332_p10 = pneg %p4331_p6 }
  0x23   : > { %p4339_p9 = pnand %p4338_p13, %p4332_p10 }
  0x25   : > { %4342 = shalt.err (!%p4339_p9)
}
  0x26   : > { %s5315_s19 = smov 128   ;;  %s5316_s20 = smov 8  }
  0x27   : > { %s5333_s1 = sld [smem:[#allocation23_spill]]  ;;  %s4354_s12 = scalar_lea.vmem %s238_s16, 768 }
  0x28   : > { %p4355_p4 = scmp.ne.s32.totalorder %s238_s16, %s4354_s12  ;;  %p4362_p10 = scmp.lt.s32.totalorder %s238_s16, %s238_s16 }
  0x29   : > { %p4363_p9 = scmp.lt.s32.totalorder %s4354_s12, %s4354_s12 }
  0x2a   : > { %p4357_p6 = pnand %p4355_p4, %p4319_p2 }
  0x2b   : > { %p4364_p11 = por %p4363_p9, %p4362_p10 }
  0x2c   : > { %p4358_p0 = pneg %p4357_p6 }
  0x2d   : > { %4183 = dma.hbm_to_vmem [thread:$0]  (!%p4641_p1), %s5333_s1, 256, %s222_s13, [#allocation9], %s5315_s19, %s5315_s19, %s5316_s20  }
  0x2e   : > { %p4365_p13 = pnand %p4364_p11, %p4358_p0 }
  0x30   : > { %4368 = shalt.err (!%p4365_p13)
}
  0x31   : > { %s5334_s3 = sld [smem:[#allocation24_spill]]  ;;  %p40_p2 = scmp.ge.s32.totalorder %s38_s17, 2 }
  0x32   : > { %p4200_p4 = scmp.lt.s32.totalorder %s4513_s26, 2  ;;  %s4672_s13 = sand.u32 1, %s4501_s23  }
  0x33   : > { %s3981_s14 = sshll.u32 %s4509_s25, 8  ;;  %s5353_s17 = smov (%p40_p2, %s38_s17), 0 }
  0x34   : > { %5335 = sst [smem:[#allocation20_spill]] %s5353_s17  ;;  %s3873_s27 = sshll.u32 %s4672_s13, 4 }
  0x35   : > { %s42_s28 = ssub.s32 %s4509_s25, %s5353_s17  ;;  %s5336_s0 = sld [smem:[#allocation22_spill]] }
  0x36   : > { %p43_p6 = scmp.eq.s32.totalorder %s42_s28, 0  ;;  %s258_s29 = scalar_lea.vmem [#allocation5], %s3873_s27 }
  0x37   : > { %4186 = dma.hbm_to_vmem [thread:$0]  (!%p4641_p1), %s5334_s3, 768, %s238_s16, [#allocation9], %s5315_s19, %s5315_s19, %s5316_s20  }
  0x38   : > { %s265_s1 = sshll.u32 %s258_s29, 4  ;;  %p4685_p1 = pnand %p4200_p4, %p4612_p5  ;;  %s266_s1 = int_to_ptr.vmem [resolvable:$true] %s265_s1 }
  0x39   : > { %s5338_s19 = sadd.s32 1, %s4501_s23  ;;  %s255_s3 = scalar_lea.sflag [#allocation6], %s4672_s13 }
  0x3a   : > { %s4692_s20 = scalar_select %p43_p6, %s4501_s23, %s5338_s19  }
  0x3b   : > { %s264_s18 = scalar_lea.hbm %s5336_s0, %s3981_s14  ;;  %p4371_p0 = pneg %p4685_p1 }
  0x3c   : > { %5339 = sst [smem:[#allocation21_spill]] %s4692_s20  ;;  %s4382_s28 = scalar_lea.vmem %s266_s1, 256 }
  0x3d   : > { %p4383_p10 = scmp.ne.s32.totalorder %s266_s1, %s4382_s28  ;;  %s4519_s29 = smov [#allocation5]  }
  0x3e   : > { %s4387_s7 = sshll.u32 %s4519_s29, 4  ;;  %s4388_s7 = int_to_ptr.vmem [resolvable:$false] %s4387_s7 }
  0x3f   : > { %p4385_p9 = pnand %p4383_p10, %p4371_p0  ;;  %s4389_s14 = scalar_lea.vmem %s4388_s7, 512 }
  0x40   : > { %p4390_p5 = scmp.lt.s32.totalorder %s266_s1, %s4388_s7  ;;  %p4391_p13 = scmp.lt.s32.totalorder %s4389_s14, %s4382_s28 }
  0x41   : > { %p4386_p11 = pneg %p4385_p9 }
  0x42   : > { %p4392_p2 = por %p4391_p13, %p4390_p5 }
  0x44   : > { %p4393_p4 = pnand %p4392_p2, %p4386_p11 }
  0x46   : > { %4396 = shalt.err (!%p4393_p4)
}
  0x47   : > { %s5340_s19 = smov 8   ;;  %s5341_s27 = smov 128  }
  0x48   : > { %4190 = dma.hbm_to_vmem [thread:$0]  (!%p4685_p1), %s264_s18, 256, %s266_s1, %s255_s3, %s5341_s27, %s5341_s27, %s5340_s19  }
  0x49   : > { %s4163_s12 = smul.u32 12, %s4672_s13  ;;  %s276_s17 = scalar_lea.sflag [#allocation12], %s4672_s13 }
  0x4a   : > { %s4164_s15 = smul.u32 192, %s4509_s25  ;;  %s4520_s23 = smov [#allocation11]  }
  0x4b   : > { %s279_s28 = scalar_lea.vmem [#allocation11], %s4163_s12  ;;  %s4415_s26 = sshll.u32 %s4520_s23, 4  ;;  %s4416_s26 = int_to_ptr.vmem [resolvable:$false] %s4415_s26 }
  0x4c   : > { %s287_s7 = scalar_lea.hbm %s5313_s5, %s4164_s15  ;;  %s288_s14 = sshll.u32 %s279_s28, 4  ;;  %s289_s14 = int_to_ptr.vmem [resolvable:$true] %s288_s14 }
  0x4d   : > { %s4410_s20 = scalar_lea.vmem %s289_s14, 192  ;;  %s4417_s1 = scalar_lea.vmem %s4416_s26, 384 }
  0x4e   : > { %p4411_p6 = scmp.ne.s32.totalorder %s289_s14, %s4410_s20  ;;  %p4418_p11 = scmp.lt.s32.totalorder %s289_s14, %s4416_s26 }
  0x4f   : > { %p4419_p5 = scmp.lt.s32.totalorder %s4417_s1, %s4410_s20 }
  0x50   : > { %p4413_p10 = pnand %p4411_p6, %p4371_p0 }
  0x51   : > { %p4420_p13 = por %p4419_p5, %p4418_p11 }
  0x52   : > { %p4414_p9 = pneg %p4413_p10 }
  0x54   : > { %p4421_p2 = pnand %p4420_p13, %p4414_p9 }
  0x56   : > { %4424 = shalt.err (!%p4421_p2)
}
  0x57   : > { %s4521_s0 = smov 32   ;;  %s4522_s3 = smov 2  }
  0x58   : > { %4193 = dma.hbm_to_vmem [thread:$0]  (!%p4685_p1), %s287_s7, 192, %s289_s14, %s276_s17, %s4521_s0, %s4521_s0, %s4522_s3  }
  0x59   : > { %300 = sbr.rel (%p4632_p12) target bundleno = 1522 (0x5f2), region = 44  ;;  %s4719_s13 = sand.u32 (!%p4632_p12), 1, %s4497_s22  }
  0x5a   : > { %s3878_s23 = sshll.u32 (!%p4632_p12), %s4719_s13, 4  ;;  %s303_s26 = scalar_lea.sflag (!%p4632_p12), [#allocation6], %s4719_s13 }
  0x5b   : > { %s306_s20 = scalar_lea.vmem (!%p4632_p12), [#allocation5], %s3878_s23 }
  0x5e   : > { %4476 = dma.done.wait (%p4618_p7), %s303_s26, 256  }
  0x5f   : > { %4478 = vsyncadd (%p4618_p7), %s303_s26, 4294967040 }
  0x60   : > { %4480 = dma.done.wait (%p4608_p3), [#allocation9], 1024  }
  0x61   : > { %4482 = vsyncadd (%p4608_p3), [#allocation9], 4294966272  ;;  %s4165_s11 = smul.u32 12, %s4719_s13  ;;  %s320_s17 = scalar_lea.sflag [#allocation12], %s4719_s13 }
  0x63   : > { %s4735_s18 = scalar_lea.vmem [#allocation11], %s4165_s11 }
  0x64   : > { %4484 = dma.done.wait (%p4618_p7), %s320_s17, 192  }
  0x65   : > { %4486 = vsyncadd (%p4618_p7), %s320_s17, 4294967104  ;;  %vm374_vm0 = vcmask 130048   ;;  %v366_v0 = vld [vmem:[#allocation8 + $0x8] sm:$0xff]  ;;  %v365_v1 = vld [vmem:[#allocation8] sm:$0xff]  ;;  %vm469_vm1 = vcmask 392192   ;;  %s4523_s27 = smov 104   ;;  %v586_v22 = vlaneseq }
  0x66   : > { %v363_v2 = vld [vmem:[%s306_s20] sm:$0xff]  ;;  %4055 = vmatprep.subr.mxu0 %v366_v0  ;;  %v461_v3 = vld [vmem:[#allocation10 + $0x28] sm:$0xff]  ;;  %v459_v6 = vld [vmem:[#allocation10 + $0x18] sm:$0xff]  ;;  %s4524_s12 = smov 120   ;;  %s4525_s15 = smov 112   ;;  %vm1085_vm2 = vcmask 64512  }
  0x67   : > { %4059 = vmatprep.mubr.msk.f32.mxu0 %vm374_vm0, %v363_v2  ;;  %v460_v4 = vld [vmem:[#allocation10 + $0x20] sm:$0xff]  ;;  %4056 = vmatpush3.msra.mxu0 %v366_v0  ;;  %v364_v5 = vld [vmem:[%s306_s20 + $0x8] sm:$0xff]  ;;  %v458_v7 = vld [vmem:[#allocation10 + $0x10] sm:$0xff]  ;;  %s4526_s29 = smov 96   ;;  %s4527_s7 = smov 88   ;;  %v587_v26 = vshrl.u32 %v586_v22, 7 }
  0x68   : > { %4062 = vmatprep.subr.mxu1 %v461_v3  ;;  %4057 = vmatprep.subr.mxu0 %v365_v1  ;;  %v457_v8 = vld [vmem:[#allocation10 + $0x8] sm:$0xff]  ;;  %v456_v9 = vld [vmem:[#allocation10] sm:$0xff]  ;;  %v3882_v11 = vld [vmem:[%s5310_s2] ss:$0 sm:$0xff]  ;;  %s4528_s28 = smov 80   ;;  %s4532_s14 = smov 8  }
  0x69   : > { %4063 = vmatpush3.msra.mxu1 %v461_v3  ;;  %4058 = vmatpush3.msra.mxu0 %v365_v1  ;;  %v3885_v15 = vld [vmem:[%s5312_s4] ss:$0 sm:$0xff]  ;;  %v4529_v20 = vmov 1983009808   ;;  %v4530_v23 = vmov 1934713408  }
  0x6a   : > { %4064 = vmatprep.subr.mxu1 %v460_v4  ;;  %4060 = vmatmul.mubr.msk.f32.vlgmr.msra.gmra.mxu0 %vm374_vm0, %v364_v5  ;;  %v584_v21 = vunpack.c.l.s4 %v4529_v20  ;;  %v646_v24 = vunpack.c.l.s4 %v4530_v23  ;;  %s356_s1 = scalar_lea.vmem [#allocation13], %s3878_s23  ;;  %s3982_s3 = sshll.u32 %s4505_s24, 8 }
  0x6b   : > { %4065 = vmatpush3.msra.mxu1 %v460_v4  ;;  %s3736_s0 = sshll.u32 %s356_s1, 4  ;;  %s5257_s11 = scalar_lea.hbm %s5314_s6, %s3982_s3  ;;  %s5251_s0 = int_to_ptr.vmem [resolvable:$true] %s3736_s0 }
  0x6c   : > { %4066 = vmatprep.subr.mxu1 %v459_v6  ;;  %v585_v25 = vunpack.c.0.s8 %v584_v21  ;;  %v647_v29 = vunpack.c.0.s8 %v646_v24  ;;  %s3721_s24 = scalar_lea.sflag [#allocation7], %s4719_s13  ;;  %s4425_s23 = scalar_lea.vmem %s5251_s0, 256 }
  0x6d   : > { %4067 = vmatpush3.msra.mxu1 %v459_v6  ;;  %p4426_p3 = scmp.ne.s32.totalorder %s5251_s0, %s4425_s23  ;;  %s4533_s17 = smov [#allocation13]  }
  0x6e   : > { %4068 = vmatprep.subr.mxu1 %v458_v7  ;;  %v4768_v30 = vsub.s32 %v585_v25, %v587_v26  ;;  %v4772_v37 = vsub.s32 %v647_v29, %v587_v26 }
  0x6f   : > { %4069 = vmatpush3.msra.mxu1 %v458_v7  ;;  %p4427_p7 = pnand %p4426_p3, %p4622_p8 }
  0x70   : > { %4070 = vmatprep.subr.mxu1 %v457_v8 }
  0x71   : > { %4071 = vmatpush3.msra.mxu1 %v457_v8  ;;  %p4428_p12 = pneg %p4427_p7 }
  0x72   : > { %4072 = vmatprep.subr.mxu1 %v456_v9 }
  0x73   : > { %4073 = vmatpush3.msra.mxu1 %v456_v9 }
 0x12a   : > { %v4061_v10 = vpop.f32.mrf.mxu0 }
 0x12b   : > { %v4748_v14 = vadd.f32 %v4061_v10, %v3882_v11 }
 0x12c   : > { %v447_v12 = vpop.f32.mrf.mxu0 }
 0x12d   : > { %v4746_v13 = vadd.f32 %v3882_v11, %v447_v12 }
 0x12f   : > { %4074 = vmatprep.mubr.msk.f32.mxu1 %vm469_vm1, %v4746_v13 }
 0x130   : > { %4075 = vmatmul.mubr.msk.f32.vlgmr.msra.gmra.mxu1 %vm469_vm1, %v4748_v14 }
 0x1f0   : > { %v4076_v16 = vpop.f32.mrf.mxu1 }
 0x1f1   : > { %v548_v17 = vadd.f32 %v4076_v16, %v3885_v15 }
 0x1f2   : > { %v542_v18 = vpop.f32.mrf.mxu1 }
 0x1f3   : > { %1114 = vrot.lane.b32.xlu1 %v548_v17, %s4523_s27  ;;  %1102 = vrot.lane.b32.xlu0 %v548_v17, %s4524_s12  ;;  %v543_v19 = vadd.f32 %v3885_v15, %v542_v18 }
 0x1f7   : > { %1108 = vrot.lane.b32.xlu0 %v548_v17, %s4525_s15  ;;  %1100 = vrot.lane.b32.xlu1 %v543_v19, %s4524_s12 }
 0x1fb   : > { %1106 = vrot.lane.b32.xlu0 %v543_v19, %s4525_s15  ;;  %1112 = vrot.lane.b32.xlu1 %v543_v19, %s4523_s27 }
 0x1ff   : > { %1120 = vrot.lane.b32.xlu0 %v548_v17, %s4526_s29  ;;  %1126 = vrot.lane.b32.xlu1 %v548_v17, %s4527_s7 }
 0x203   : > { %1118 = vrot.lane.b32.xlu0 %v543_v19, %s4526_s29  ;;  %1124 = vrot.lane.b32.xlu1 %v543_v19, %s4527_s7 }
 0x207   : > { %1648 = vrot.lane.b32.xlu0 %v548_v17, %s4528_s28 }
 0x20b   : > { %1646 = vrot.lane.b32.xlu0 %v543_v19, %s4528_s28 }
 0x265   : > { %v1115_v27 = vpop.permute.xlu1 %1114  ;;  %v1103_v28 = vpop.permute.xlu0 %1102 }
 0x266   : > { %1652 = vrot.lane.b32.xlu1 %v1103_v28, %s4528_s28  ;;  %v1280_v31 = vcombine.low %v1103_v28, %v1115_v27  ;;  %v1281_v32 = vcombine.high %v1103_v28, %v1115_v27 }
 0x268   : > { %v1288_v38 = vrot.slane %v1280_v31, %v4768_v30  ;;  %v1295_v39 = vrot.slane %v1281_v32, %v4768_v30 }
 0x269   : > { %v1109_v33 = vpop.permute.xlu0 %1108  ;;  %v1101_v34 = vpop.permute.xlu1 %1100 }
 0x26a   : > { %v1264_v35 = vcombine.low %v548_v17, %v1109_v33  ;;  %v1265_v36 = vcombine.high %v548_v17, %v1109_v33  ;;  %1656 = vrot.lane.b32.xlu0 %v1109_v33, %s4528_s28  ;;  %1660 = vrot.lane.b32.xlu1 %v1115_v27, %s4528_s28 }
 0x26c   : > { %v1272_v40 = vrot.slane %v1264_v35, %v4768_v30  ;;  %v1279_v41 = vrot.slane %v1265_v36, %v4768_v30 }
 0x26d   : > { %v1107_v42 = vpop.permute.xlu0 %1106  ;;  %v1113_v43 = vpop.permute.xlu1 %1112 }
 0x26e   : > { %v1326_v44 = vcombine.low %v1272_v40, %v1288_v38  ;;  %v1327_v45 = vcombine.high %v1272_v40, %v1288_v38  ;;  %v1342_v46 = vcombine.low %v1279_v41, %v1295_v39  ;;  %v1343_v47 = vcombine.high %v1279_v41, %v1295_v39  ;;  %1654 = vrot.lane.b32.xlu0 %v1107_v42, %s4528_s28 }
 0x26f   : > { %v1130_v48 = vcombine.low %v543_v19, %v1107_v42  ;;  %v1131_v49 = vcombine.high %v543_v19, %v1107_v42  ;;  %v1146_v50 = vcombine.low %v1101_v34, %v1113_v43  ;;  %v1147_v51 = vcombine.high %v1101_v34, %v1113_v43  ;;  %1650 = vrot.lane.b32.xlu1 %v1101_v34, %s4528_s28 }
 0x270   : > { %v1334_v52 = vrot.slane %v1326_v44, %v4772_v37  ;;  %v1341_v53 = vrot.slane %v1327_v45, %v4772_v37  ;;  %v1350_v54 = vrot.slane %v1342_v46, %v4772_v37  ;;  %v1357_v55 = vrot.slane %v1343_v47, %v4772_v37 }
 0x271   : > { %v1138_v56 = vrot.slane %v1130_v48, %v4768_v30  ;;  %v1145_v57 = vrot.slane %v1131_v49, %v4768_v30  ;;  %v1154_v58 = vrot.slane %v1146_v50, %v4768_v30  ;;  %v1161_v59 = vrot.slane %v1147_v51, %v4768_v30  ;;  %v1121_v60 = vpop.permute.xlu0 %1120  ;;  %v1127_v9 = vpop.permute.xlu1 %1126 }
 0x272   : > { %v3912_v61 = vcombine.low %v1334_v52, %v1341_v53  ;;  %v3914_v62 = vcombine.high %v1334_v52, %v1341_v53  ;;  %v3916_v63 = vcombine.low %v1350_v54, %v1357_v55  ;;  %v3918_v0 = vcombine.high %v1350_v54, %v1357_v55  ;;  %1664 = vrot.lane.b32.xlu0 %v1121_v60, %s4528_s28 }
 0x273   : > { %v1192_v1 = vcombine.low %v1138_v56, %v1154_v58  ;;  %v1193_v2 = vcombine.high %v1138_v56, %v1154_v58  ;;  %v1208_v3 = vcombine.low %v1145_v57, %v1161_v59  ;;  %v1209_v4 = vcombine.high %v1145_v57, %v1161_v59  ;;  %1658 = vrot.lane.b32.xlu1 %v1113_v43, %s4528_s28 }
 0x274   : > { %v1524_v5 = vrot.slane %v3912_v61, %v4768_v30  ;;  %v1540_v6 = vrot.slane %v3914_v62, %v4768_v30  ;;  %v1556_v7 = vrot.slane %v3916_v63, %v4768_v30  ;;  %v1572_v8 = vrot.slane %v3918_v0, %v4768_v30 }
 0x275   : > { %v1200_v10 = vrot.slane %v1192_v1, %v4772_v37  ;;  %v1207_v11 = vrot.slane %v1193_v2, %v4772_v37  ;;  %v1216_v12 = vrot.slane %v1208_v3, %v4772_v37  ;;  %v1223_v15 = vrot.slane %v1209_v4, %v4772_v37  ;;  %v1119_v16 = vpop.permute.xlu0 %1118  ;;  %v1125_v39 = vpop.permute.xlu1 %1124 }
 0x276   : > { %v1580_v17 = vcombine.low %v1524_v5, %v1540_v6  ;;  %v1581_v18 = vcombine.high %v1524_v5, %v1540_v6  ;;  %v1604_v19 = vcombine.low %v1556_v7, %v1572_v8  ;;  %v1605_v20 = vcombine.high %v1556_v7, %v1572_v8  ;;  %1662 = vrot.lane.b32.xlu0 %v1119_v16, %s4528_s28 }
 0x277   : > { %v3904_v21 = vcombine.low %v1200_v10, %v1207_v11  ;;  %v3906_v22 = vcombine.high %v1200_v10, %v1207_v11  ;;  %v3908_v23 = vcombine.low %v1216_v12, %v1223_v15  ;;  %v3910_v24 = vcombine.high %v1216_v12, %v1223_v15  ;;  %1668 = vrot.lane.b32.xlu1 %v1127_v9, %s4528_s28 }
 0x278   : > { %v1588_v25 = vrot.slane %v1580_v17, %v4772_v37  ;;  %v1595_v26 = vrot.slane %v1581_v18, %v4772_v37  ;;  %v1612_v27 = vrot.slane %v1604_v19, %v4772_v37  ;;  %v1619_v28 = vrot.slane %v1605_v20, %v4772_v37 }
 0x279   : > { %v1406_v29 = vrot.slane %v3904_v21, %v4768_v30  ;;  %v1422_v31 = vrot.slane %v3906_v22, %v4768_v30  ;;  %v1438_v32 = vrot.slane %v3908_v23, %v4768_v30  ;;  %v1454_v33 = vrot.slane %v3910_v24, %v4768_v30 }
 0x27a   : > { %v1628_v34 = vcombine.low %v1588_v25, %v1612_v27  ;;  %v1629_v35 = vcombine.high %v1588_v25, %v1612_v27  ;;  %v1630_v36 = vcombine.low %v1595_v26, %v1619_v28  ;;  %v1631_v38 = vcombine.high %v1595_v26, %v1619_v28  ;;  %553 = vrot.lane.b32.xlu0 %v4748_v14, %s4524_s12 }
 0x27b   : > { %v1462_v40 = vcombine.low %v1406_v29, %v1422_v31  ;;  %v1463_v41 = vcombine.high %v1406_v29, %v1422_v31  ;;  %v1486_v42 = vcombine.low %v1438_v32, %v1454_v33  ;;  %v1487_v43 = vcombine.high %v1438_v32, %v1454_v33  ;;  %1666 = vrot.lane.b32.xlu1 %v1125_v39, %s4528_s28 }
 0x27c   : > { %1635 = vst.msk [vmem:[#allocation3 + $0x8] sm:$0xff] %vm1085_vm2, %v1628_v34  ;;  %1637 = vst.msk [vmem:[#allocation3 + $0x18] sm:$0xff] %vm1085_vm2, %v1629_v35  ;;  %v4531_v44 = vmov 0.0   ;;  %v1303_v46 = vrot.slane %v1121_v60, %v4768_v30  ;;  %v1318_v48 = vrot.slane %v1127_v9, %v4768_v30  ;;  %v1169_v2 = vrot.slane %v1119_v16, %v4768_v30 }
 0x27d   : > { %1639 = vst.msk [vmem:[#allocation3 + $0x28] sm:$0xff] %vm1085_vm2, %v1630_v36  ;;  %1641 = vst.msk [vmem:[#allocation3 + $0x38] sm:$0xff] %vm1085_vm2, %v1631_v38  ;;  %v1296_v45 = vcombine.high %v1121_v60, %v4531_v44  ;;  %v1311_v47 = vcombine.high %v1127_v9, %v4531_v44  ;;  %v1470_v49 = vrot.slane %v1462_v40, %v4772_v37 }
 0x27e   : > { %v1477_v50 = vrot.slane %v1463_v41, %v4772_v37  ;;  %v1494_v51 = vrot.slane %v1486_v42, %v4772_v37  ;;  %v1501_v52 = vrot.slane %v1487_v43, %v4772_v37  ;;  %v1358_v55 = vcombine.low %v1303_v46, %v1318_v48  ;;  %565 = vrot.lane.b32.xlu0 %v4748_v14, %s4523_s27 }
 0x27f   : > { %v1310_v53 = vrot.slane %v1296_v45, %v4768_v30  ;;  %v1325_v54 = vrot.slane %v1311_v47, %v4768_v30  ;;  %v1359_v56 = vcombine.high %v1303_v46, %v1318_v48  ;;  %559 = vrot.lane.b32.xlu1 %v4748_v14, %s4525_s15  ;;  %v1162_v1 = vcombine.high %v1119_v16, %v4531_v44 }
 0x280   : > { %v1510_v57 = vcombine.low %v1470_v49, %v1494_v51  ;;  %v1511_v58 = vcombine.high %v1470_v49, %v1494_v51  ;;  %v1512_v59 = vcombine.low %v1477_v50, %v1501_v52  ;;  %v1513_v60 = vcombine.high %v1477_v50, %v1501_v52  ;;  %v1649_v52 = vpop.permute.xlu0 %1648 }
 0x281   : > { %v1366_v61 = vrot.slane %v1358_v55, %v4772_v37  ;;  %v1373_v62 = vrot.slane %v1359_v56, %v4772_v37  ;;  %v1374_v63 = vcombine.low %v1310_v53, %v1325_v54  ;;  %v1375_v0 = vcombine.high %v1310_v53, %v1325_v54 }
 0x282   : > { %1634 = vst.msk [vmem:[#allocation3] sm:$0xff] %vm1085_vm2, %v1510_v57  ;;  %1636 = vst.msk [vmem:[#allocation3 + $0x10] sm:$0xff] %vm1085_vm2, %v1511_v58  ;;  %v1177_v3 = vcombine.high %v1125_v39, %v4531_v44  ;;  %v1184_v4 = vrot.slane %v1125_v39, %v4768_v30  ;;  %551 = vrot.lane.b32.xlu0 %v4746_v13, %s4524_s12  ;;  %v1176_v9 = vrot.slane %v1162_v1, %v4768_v30 }
 0x283   : > { %1638 = vst.msk [vmem:[#allocation3 + $0x20] sm:$0xff] %vm1085_vm2, %v1512_v59  ;;  %1640 = vst.msk [vmem:[#allocation3 + $0x30] sm:$0xff] %vm1085_vm2, %v1513_v60  ;;  %v1382_v5 = vrot.slane %v1374_v63, %v4772_v37  ;;  %v1389_v6 = vrot.slane %v1375_v0, %v4772_v37  ;;  %v3913_v7 = vcombine.low %v1366_v61, %v1373_v62  ;;  %571 = vrot.lane.b32.xlu1 %v4748_v14, %s4526_s29 }
 0x284   : > { %v3915_v8 = vcombine.high %v1366_v61, %v1373_v62  ;;  %v1191_v10 = vrot.slane %v1177_v3, %v4768_v30  ;;  %v1224_v11 = vcombine.low %v1169_v2, %v1184_v4  ;;  %v1225_v12 = vcombine.high %v1169_v2, %v1184_v4  ;;  %v1647_v53 = vpop.permute.xlu0 %1646 }
 0x285   : > { %v1531_v15 = vrot.slane %v3913_v7, %v4768_v30  ;;  %v3917_v17 = vcombine.low %v1382_v5, %v1389_v6  ;;  %v3919_v18 = vcombine.high %v1382_v5, %v1389_v6 }
 0x286   : > { %v1547_v16 = vrot.slane %v3915_v8, %v4768_v30  ;;  %v1232_v19 = vrot.slane %v1224_v11, %v4772_v37  ;;  %v1239_v20 = vrot.slane %v1225_v12, %v4772_v37  ;;  %v1240_v21 = vcombine.low %v1176_v9, %v1191_v10  ;;  %557 = vrot.lane.b32.xlu0 %v4746_v13, %s4525_s15 }
 0x287   : > { %v1241_v22 = vcombine.high %v1176_v9, %v1191_v10  ;;  %v1563_v23 = vrot.slane %v3917_v17, %v4768_v30  ;;  %v1579_v24 = vrot.slane %v3919_v18, %v4768_v30 }
 0x288   : > { %v1596_v25 = vcombine.low %v1531_v15, %v1547_v16  ;;  %v1248_v26 = vrot.slane %v1240_v21, %v4772_v37  ;;  %v3905_v28 = vcombine.low %v1232_v19, %v1239_v20  ;;  %v3907_v29 = vcombine.high %v1232_v19, %v1239_v20 }
 0x289   : > { %v1255_v27 = vrot.slane %v1241_v22, %v4772_v37  ;;  %v1620_v31 = vcombine.low %v1563_v23, %v1579_v24  ;;  %v2200_v32 = vld [vmem:[#allocation3] sm:$0xff] }
 0x28a   : > { %v2204_v33 = vld [vmem:[#allocation3 + $0x20] sm:$0xff]  ;;  %v1413_v34 = vrot.slane %v3905_v28, %v4768_v30  ;;  %v1429_v35 = vrot.slane %v3907_v29, %v4768_v30  ;;  %4081 = vmatprep.mubr.msk.f32.mxu0 %vm1085_vm2, %v2200_v32  ;;  %v1603_v39 = vrot.slane %v1596_v25, %v4772_v37  ;;  %563 = vrot.lane.b32.xlu0 %v4746_v13, %s4523_s27 }
 0x28b   : > { %v3909_v36 = vcombine.low %v1248_v26, %v1255_v27  ;;  %v3911_v38 = vcombine.high %v1248_v26, %v1255_v27  ;;  %v1627_v40 = vrot.slane %v1620_v31, %v4772_v37  ;;  %4095 = vmatprep.mubr.msk.f32.mxu1 %vm1085_vm2, %v2204_v33 }
 0x28c   : > { %v1478_v43 = vcombine.low %v1413_v34, %v1429_v35 }
 0x28d   : > { %v1445_v41 = vrot.slane %v3909_v36, %v4768_v30  ;;  %v1461_v42 = vrot.slane %v3911_v38, %v4768_v30  ;;  %v1632_v45 = vcombine.low %v1603_v39, %v1627_v40  ;;  %v1633_v46 = vcombine.high %v1603_v39, %v1627_v40 }
 0x28e   : > { %v1485_v48 = vrot.slane %v1478_v43, %v4772_v37 }
 0x28f   : > { %v1502_v47 = vcombine.low %v1445_v41, %v1461_v42  ;;  %1643 = vst.msk [vmem:[#allocation3 + $0x48] sm:$0xff] %vm1085_vm2, %v1632_v45  ;;  %1645 = vst.msk [vmem:[#allocation3 + $0x58] sm:$0xff] %vm1085_vm2, %v1633_v46 }
 0x291   : > { %v1509_v49 = vrot.slane %v1502_v47, %v4772_v37 }
 0x293   : > { %v1514_v50 = vcombine.low %v1485_v48, %v1509_v49  ;;  %v1515_v51 = vcombine.high %v1485_v48, %v1509_v49 }
 0x295   : > { %1642 = vst.msk [vmem:[#allocation3 + $0x40] sm:$0xff] %vm1085_vm2, %v1514_v50  ;;  %1644 = vst.msk [vmem:[#allocation3 + $0x50] sm:$0xff] %vm1085_vm2, %v1515_v51 }
 0x2d8   : > { %v1653_v54 = vpop.permute.xlu1 %1652 }
 0x2dc   : > { %v1657_v55 = vpop.permute.xlu0 %1656  ;;  %v1661_v56 = vpop.permute.xlu1 %1660 }
 0x2dd   : > { %v1816_v57 = vcombine.low %v1649_v52, %v1657_v55  ;;  %v1817_v58 = vcombine.high %v1649_v52, %v1657_v55  ;;  %v1832_v59 = vcombine.low %v1653_v54, %v1661_v56  ;;  %v1833_v60 = vcombine.high %v1653_v54, %v1661_v56 }
 0x2df   : > { %v1824_v61 = vrot.slane %v1816_v57, %v4768_v30  ;;  %v1831_v62 = vrot.slane %v1817_v58, %v4768_v30  ;;  %v1840_v63 = vrot.slane %v1832_v59, %v4768_v30  ;;  %v1847_v0 = vrot.slane %v1833_v60, %v4768_v30 }
 0x2e0   : > { %v1655_v1 = vpop.permute.xlu0 %1654 }
 0x2e1   : > { %v1878_v2 = vcombine.low %v1824_v61, %v1840_v63  ;;  %v1879_v3 = vcombine.high %v1824_v61, %v1840_v63  ;;  %v1894_v4 = vcombine.low %v1831_v62, %v1847_v0  ;;  %v1895_v5 = vcombine.high %v1831_v62, %v1847_v0  ;;  %v1651_v6 = vpop.permute.xlu1 %1650 }
 0x2e2   : > { %v1682_v7 = vcombine.low %v1647_v53, %v1655_v1  ;;  %v1683_v8 = vcombine.high %v1647_v53, %v1655_v1 }
 0x2e3   : > { %v1886_v9 = vrot.slane %v1878_v2, %v4772_v37  ;;  %v1893_v10 = vrot.slane %v1879_v3, %v4772_v37  ;;  %v1902_v11 = vrot.slane %v1894_v4, %v4772_v37  ;;  %v1909_v12 = vrot.slane %v1895_v5, %v4772_v37 }
 0x2e4   : > { %v1665_v15 = vpop.permute.xlu0 %1664  ;;  %v1690_v21 = vrot.slane %v1682_v7, %v4768_v30  ;;  %v1697_v22 = vrot.slane %v1683_v8, %v4768_v30 }
 0x2e5   : > { %v3928_v16 = vcombine.low %v1886_v9, %v1893_v10  ;;  %v3930_v17 = vcombine.high %v1886_v9, %v1893_v10  ;;  %v3932_v18 = vcombine.low %v1902_v11, %v1909_v12  ;;  %v3934_v19 = vcombine.high %v1902_v11, %v1909_v12  ;;  %v1659_v20 = vpop.permute.xlu1 %1658 }
 0x2e6   : > { %v1698_v23 = vcombine.low %v1651_v6, %v1659_v20  ;;  %v1699_v24 = vcombine.high %v1651_v6, %v1659_v20  ;;  %v1848_v29 = vcombine.high %v1665_v15, %v4531_v44  ;;  %v1855_v31 = vrot.slane %v1665_v15, %v4768_v30 }
 0x2e7   : > { %v2076_v25 = vrot.slane %v3928_v16, %v4768_v30  ;;  %v2092_v26 = vrot.slane %v3930_v17, %v4768_v30  ;;  %v2108_v27 = vrot.slane %v3932_v18, %v4768_v30  ;;  %v2124_v28 = vrot.slane %v3934_v19, %v4768_v30 }
 0x2e8   : > { %v1706_v32 = vrot.slane %v1698_v23, %v4768_v30  ;;  %v1713_v33 = vrot.slane %v1699_v24, %v4768_v30  ;;  %v1663_v34 = vpop.permute.xlu0 %1662  ;;  %v1862_v63 = vrot.slane %v1848_v29, %v4768_v30 }
 0x2e9   : > { %v2132_v35 = vcombine.low %v2076_v25, %v2092_v26  ;;  %v2133_v36 = vcombine.high %v2076_v25, %v2092_v26  ;;  %v2156_v38 = vcombine.low %v2108_v27, %v2124_v28  ;;  %v2157_v39 = vcombine.high %v2108_v27, %v2124_v28  ;;  %v1669_v45 = vpop.permute.xlu1 %1668 }
 0x2ea   : > { %v1744_v40 = vcombine.low %v1690_v21, %v1706_v32  ;;  %v1745_v41 = vcombine.high %v1690_v21, %v1706_v32  ;;  %v1760_v42 = vcombine.low %v1697_v22, %v1713_v33  ;;  %v1761_v43 = vcombine.high %v1697_v22, %v1713_v33 }
 0x2eb   : > { %v2140_v46 = vrot.slane %v2132_v35, %v4772_v37  ;;  %v2147_v47 = vrot.slane %v2133_v36, %v4772_v37  ;;  %v2164_v48 = vrot.slane %v2156_v38, %v4772_v37  ;;  %v2171_v49 = vrot.slane %v2157_v39, %v4772_v37 }
 0x2ec   : > { %v1752_v50 = vrot.slane %v1744_v40, %v4772_v37  ;;  %v1759_v51 = vrot.slane %v1745_v41, %v4772_v37  ;;  %v1768_v52 = vrot.slane %v1760_v42, %v4772_v37  ;;  %v1775_v53 = vrot.slane %v1761_v43, %v4772_v37  ;;  %v4899_v54 = vpop.permute.xlu0 %553 }
 0x2ed   : > { %v2180_v55 = vcombine.low %v2140_v46, %v2164_v48  ;;  %v2181_v56 = vcombine.high %v2140_v46, %v2164_v48  ;;  %v2182_v57 = vcombine.low %v2147_v47, %v2171_v49  ;;  %v2183_v58 = vcombine.high %v2147_v47, %v2171_v49  ;;  %v1667_v7 = vpop.permute.xlu1 %1666 }
 0x2ee   : > { %v3920_v59 = vcombine.low %v1752_v50, %v1759_v51  ;;  %v3922_v60 = vcombine.high %v1752_v50, %v1759_v51  ;;  %v3924_v61 = vcombine.low %v1768_v52, %v1775_v53  ;;  %v3926_v62 = vcombine.high %v1768_v52, %v1775_v53 }
 0x2ef   : > { %2187 = vst.msk [vmem:[#allocation4 + $0x8] sm:$0xff] %vm1085_vm2, %v2180_v55  ;;  %2189 = vst.msk [vmem:[#allocation4 + $0x18] sm:$0xff] %vm1085_vm2, %v2181_v56  ;;  %v1714_v0 = vcombine.high %v1663_v34, %v4531_v44  ;;  %v1863_v1 = vcombine.high %v1669_v45, %v4531_v44  ;;  %v1870_v2 = vrot.slane %v1669_v45, %v4768_v30 }
 0x2f0   : > { %2191 = vst.msk [vmem:[#allocation4 + $0x28] sm:$0xff] %vm1085_vm2, %v2182_v57  ;;  %2193 = vst.msk [vmem:[#allocation4 + $0x38] sm:$0xff] %vm1085_vm2, %v2183_v58  ;;  %v1958_v3 = vrot.slane %v3920_v59, %v4768_v30  ;;  %v1974_v4 = vrot.slane %v3922_v60, %v4768_v30  ;;  %v1990_v5 = vrot.slane %v3924_v61, %v4768_v30  ;;  %v566_v12 = vpop.permute.xlu0 %565 }
 0x2f1   : > { %v2006_v6 = vrot.slane %v3926_v62, %v4768_v30  ;;  %v1721_v8 = vrot.slane %v1663_v34, %v4768_v30  ;;  %v1877_v9 = vrot.slane %v1863_v1, %v4768_v30  ;;  %v1910_v10 = vcombine.low %v1855_v31, %v1870_v2  ;;  %v560_v36 = vpop.permute.xlu1 %559 }
 0x2f2   : > { %v1911_v11 = vcombine.high %v1855_v31, %v1870_v2  ;;  %v2014_v15 = vcombine.low %v1958_v3, %v1974_v4  ;;  %v2015_v16 = vcombine.high %v1958_v3, %v1974_v4  ;;  %v1729_v46 = vcombine.high %v1667_v7, %v4531_v44 }
 0x2f3   : > { %v2038_v17 = vcombine.low %v1990_v5, %v2006_v6  ;;  %v2039_v18 = vcombine.high %v1990_v5, %v2006_v6  ;;  %v1918_v19 = vrot.slane %v1910_v10, %v4772_v37  ;;  %v1926_v21 = vcombine.low %v1862_v63, %v1877_v9 }
 0x2f4   : > { %v1925_v20 = vrot.slane %v1911_v11, %v4772_v37  ;;  %v1927_v22 = vcombine.high %v1862_v63, %v1877_v9  ;;  %v2022_v23 = vrot.slane %v2014_v15, %v4772_v37  ;;  %v2029_v24 = vrot.slane %v2015_v16, %v4772_v37  ;;  %v4925_v45 = vpop.permute.xlu0 %551 }
 0x2f5   : > { %v2046_v25 = vrot.slane %v2038_v17, %v4772_v37  ;;  %v2053_v26 = vrot.slane %v2039_v18, %v4772_v37  ;;  %v1934_v27 = vrot.slane %v1926_v21, %v4772_v37  ;;  %v1736_v47 = vrot.slane %v1667_v7, %v4768_v30 }
 0x2f6   : > { %v1941_v28 = vrot.slane %v1927_v22, %v4772_v37  ;;  %v3929_v29 = vcombine.low %v1918_v19, %v1925_v20  ;;  %v3931_v31 = vcombine.high %v1918_v19, %v1925_v20  ;;  %v2213_v38 = vld [vmem:[#allocation4 + $0x8] sm:$0xff]  ;;  %v731_v48 = vcombine.low %v4899_v54, %v566_v12 }
 0x2f7   : > { %v2062_v32 = vcombine.low %v2022_v23, %v2046_v25  ;;  %v2063_v33 = vcombine.high %v2022_v23, %v2046_v25  ;;  %v2064_v34 = vcombine.low %v2029_v24, %v2053_v26  ;;  %v2065_v35 = vcombine.high %v2029_v24, %v2053_v26  ;;  %v2217_v39 = vld [vmem:[#allocation4 + $0x28] sm:$0xff]  ;;  %4077 = vmatprep.subr.msk.mxu0 %vm1085_vm2, %v2213_v38 }
 0x2f8   : > { %v2083_v40 = vrot.slane %v3929_v29, %v4768_v30  ;;  %v2099_v41 = vrot.slane %v3931_v31, %v4768_v30  ;;  %v3933_v42 = vcombine.low %v1934_v27, %v1941_v28  ;;  %v3935_v43 = vcombine.high %v1934_v27, %v1941_v28  ;;  %4091 = vmatprep.subr.msk.mxu1 %vm1085_vm2, %v2217_v39  ;;  %v4953_v6 = vpop.permute.xlu0 %557 }
 0x2f9   : > { %2186 = vst.msk [vmem:[#allocation4] sm:$0xff] %vm1085_vm2, %v2062_v32  ;;  %2188 = vst.msk [vmem:[#allocation4 + $0x10] sm:$0xff] %vm1085_vm2, %v2063_v33  ;;  %v732_v49 = vcombine.high %v4899_v54, %v566_v12  ;;  %v715_v53 = vcombine.low %v4748_v14, %v560_v36  ;;  %4078 = vmatpush3.xpose.msk.msra.mxu0 %vm1085_vm2, %v2213_v38  ;;  %v1728_v55 = vrot.slane %v1714_v0, %v4768_v30 }
 0x2fa   : > { %2190 = vst.msk [vmem:[#allocation4 + $0x20] sm:$0xff] %vm1085_vm2, %v2064_v34  ;;  %2192 = vst.msk [vmem:[#allocation4 + $0x30] sm:$0xff] %vm1085_vm2, %v2065_v35  ;;  %v2115_v50 = vrot.slane %v3933_v42, %v4768_v30  ;;  %v2131_v51 = vrot.slane %v3935_v43, %v4768_v30  ;;  %v2148_v52 = vcombine.low %v2083_v40, %v2099_v41  ;;  %4092 = vmatpush3.xpose.msk.msra.mxu1 %vm1085_vm2, %v2217_v39  ;;  %v2201_v40 = vld [vmem:[#allocation3 + $0x8] sm:$0xff] }
 0x2fb   : > { %v1743_v56 = vrot.slane %v1729_v46, %v4768_v30  ;;  %v1776_v57 = vcombine.low %v1721_v8, %v1736_v47  ;;  %v1777_v58 = vcombine.high %v1721_v8, %v1736_v47  ;;  %v739_v60 = vrot.slane %v731_v48, %v4768_v30  ;;  %v2205_v47 = vld [vmem:[#allocation3 + $0x28] sm:$0xff] }
 0x2fc   : > { %v2155_v54 = vrot.slane %v2148_v52, %v4772_v37  ;;  %v2172_v59 = vcombine.low %v2115_v50, %v2131_v51  ;;  %v716_v61 = vcombine.high %v4748_v14, %v560_v36  ;;  %v746_v3 = vrot.slane %v732_v49, %v4768_v30  ;;  %v564_v35 = vpop.permute.xlu0 %563  ;;  %v2215_v36 = vld [vmem:[#allocation4 + $0x18] sm:$0xff] }
 0x2fd   : > { %v1784_v62 = vrot.slane %v1776_v57, %v4772_v37  ;;  %v1791_v63 = vrot.slane %v1777_v58, %v4772_v37  ;;  %v1792_v1 = vcombine.low %v1728_v55, %v1743_v56  ;;  %v1793_v2 = vcombine.high %v1728_v55, %v1743_v56  ;;  %v2202_v57 = vld [vmem:[#allocation3 + $0x10] sm:$0xff] }
 0x2fe   : > { %v2179_v0 = vrot.slane %v2172_v59, %v4772_v37  ;;  %v723_v4 = vrot.slane %v715_v53, %v4768_v30  ;;  %v730_v5 = vrot.slane %v716_v61, %v4768_v30  ;;  %v581_v39 = vcombine.low %v4746_v13, %v4953_v6 }
 0x2ff   : > { %v1800_v7 = vrot.slane %v1792_v1, %v4772_v37  ;;  %v1807_v8 = vrot.slane %v1793_v2, %v4772_v37  ;;  %v3921_v9 = vcombine.low %v1784_v62, %v1791_v63  ;;  %v3923_v10 = vcombine.high %v1784_v62, %v1791_v63 }
 0x300   : > { %v2184_v11 = vcombine.low %v2155_v54, %v2179_v0  ;;  %v2185_v12 = vcombine.high %v2155_v54, %v2179_v0  ;;  %v777_v15 = vcombine.low %v723_v4, %v739_v60  ;;  %v778_v16 = vcombine.high %v723_v4, %v739_v60  ;;  %v2212_v17 = vld [vmem:[#allocation4] sm:$0xff] }
 0x301   : > { %v2216_v18 = vld [vmem:[#allocation4 + $0x20] sm:$0xff]  ;;  %v1965_v19 = vrot.slane %v3921_v9, %v4768_v30  ;;  %v1981_v20 = vrot.slane %v3923_v10, %v4768_v30  ;;  %v3925_v21 = vcombine.low %v1800_v7, %v1807_v8  ;;  %v3927_v22 = vcombine.high %v1800_v7, %v1807_v8  ;;  %4079 = vmatprep.subr.msk.mxu0 %vm1085_vm2, %v2212_v17 }
 0x302   : > { %2195 = vst.msk [vmem:[#allocation4 + $0x48] sm:$0xff] %vm1085_vm2, %v2184_v11  ;;  %2197 = vst.msk [vmem:[#allocation4 + $0x58] sm:$0xff] %vm1085_vm2, %v2185_v12  ;;  %v785_v23 = vrot.slane %v777_v15, %v4772_v37  ;;  %v792_v24 = vrot.slane %v778_v16, %v4772_v37  ;;  %v793_v25 = vcombine.low %v730_v5, %v746_v3  ;;  %4093 = vmatprep.subr.msk.mxu1 %vm1085_vm2, %v2216_v18  ;;  %v2208_v0 = vld [vmem:[#allocation3 + $0x40] sm:$0xff]  ;;  %v2219_v12 = vld [vmem:[#allocation4 + $0x38] sm:$0xff] }
 0x303   : > { %v794_v26 = vcombine.high %v730_v5, %v746_v3  ;;  %v1997_v27 = vrot.slane %v3925_v21, %v4768_v30  ;;  %v2013_v28 = vrot.slane %v3927_v22, %v4768_v30  ;;  %v2030_v29 = vcombine.low %v1965_v19, %v1981_v20  ;;  %4080 = vmatpush3.xpose.msk.msra.mxu0 %vm1085_vm2, %v2212_v17  ;;  %v2214_v5 = vld [vmem:[#allocation4 + $0x10] sm:$0xff] }
 0x304   : > { %v801_v31 = vrot.slane %v793_v25, %v4772_v37  ;;  %v3896_v33 = vcombine.low %v785_v23, %v792_v24  ;;  %v3898_v34 = vcombine.high %v785_v23, %v792_v24  ;;  %4094 = vmatpush3.xpose.msk.msra.mxu1 %vm1085_vm2, %v2216_v18  ;;  %4084 = vmatprep.subr.msk.mxu0 %vm1085_vm2, %v2215_v36  ;;  %v2203_v23 = vld [vmem:[#allocation3 + $0x18] sm:$0xff] }
 0x305   : > { %v808_v32 = vrot.slane %v794_v26, %v4772_v37  ;;  %v2054_v38 = vcombine.low %v1997_v27, %v2013_v28  ;;  %v2037_v48 = vrot.slane %v2030_v29, %v4772_v37  ;;  %v582_v50 = vcombine.high %v4746_v13, %v4953_v6  ;;  %v2206_v28 = vld [vmem:[#allocation3 + $0x30] sm:$0xff] }
 0x306   : > { %v975_v41 = vrot.slane %v3896_v33, %v4768_v30  ;;  %v991_v42 = vrot.slane %v3898_v34, %v4768_v30  ;;  %4082 = vmatmul.mubr.msk.f32.vlgmr.msra.gmra.mxu0 %vm1085_vm2, %v2201_v40  ;;  %v597_v51 = vcombine.low %v4925_v45, %v564_v35  ;;  %v589_v59 = vrot.slane %v581_v39, %v4768_v30  ;;  %v2218_v29 = vld [vmem:[#allocation4 + $0x30] sm:$0xff] }
 0x307   : > { %v3900_v43 = vcombine.low %v801_v31, %v808_v32  ;;  %v3902_v46 = vcombine.high %v801_v31, %v808_v32  ;;  %v2061_v49 = vrot.slane %v2054_v38, %v4772_v37  ;;  %4096 = vmatmul.mubr.msk.f32.vlgmr.msra.gmra.mxu1 %vm1085_vm2, %v2205_v47  ;;  %4085 = vmatpush3.xpose.msk.msra.mxu0 %vm1085_vm2, %v2215_v36 }
 0x308   : > { %v1031_v55 = vcombine.low %v975_v41, %v991_v42  ;;  %v1032_v56 = vcombine.high %v975_v41, %v991_v42  ;;  %v598_v60 = vcombine.high %v4925_v45, %v564_v35  ;;  %4088 = vmatprep.mubr.msk.f32.mxu0 %vm1085_vm2, %v2202_v57  ;;  %v596_v3 = vrot.slane %v582_v50, %v4768_v30  ;;  %v2209_v42 = vld [vmem:[#allocation3 + $0x48] sm:$0xff]  ;;  %v2207_v50 = vld [vmem:[#allocation3 + $0x38] sm:$0xff] }
 0x309   : > { %v1007_v52 = vrot.slane %v3900_v43, %v4768_v30  ;;  %v1023_v53 = vrot.slane %v3902_v46, %v4768_v30  ;;  %v2066_v58 = vcombine.low %v2037_v48, %v2061_v49  ;;  %v2067_v54 = vcombine.high %v2037_v48, %v2061_v49  ;;  %v2221_v61 = vld [vmem:[#allocation4 + $0x48] sm:$0xff]  ;;  %4109 = vmatprep.mubr.msk.f32.mxu1 %vm1085_vm2, %v2208_v0  ;;  %v2223_v41 = vld [vmem:[#allocation4 + $0x58] sm:$0xff] }
 0x30a   : > { %v1039_v62 = vrot.slane %v1031_v55, %v4772_v37  ;;  %v1046_v63 = vrot.slane %v1032_v56, %v4772_v37  ;;  %4105 = vmatprep.subr.msk.mxu1 %vm1085_vm2, %v2221_v61  ;;  %v605_v45 = vrot.slane %v597_v51, %v4768_v30  ;;  %v612_v4 = vrot.slane %v598_v60, %v4768_v30  ;;  %v2210_v56 = vld [vmem:[#allocation3 + $0x50] sm:$0xff] }
 0x30b   : > { %v1055_v1 = vcombine.low %v1007_v52, %v1023_v53  ;;  %v1056_v2 = vcombine.high %v1007_v52, %v1023_v53  ;;  %2194 = vst.msk [vmem:[#allocation4 + $0x40] sm:$0xff] %vm1085_vm2, %v2066_v58  ;;  %2196 = vst.msk [vmem:[#allocation4 + $0x50] sm:$0xff] %vm1085_vm2, %v2067_v54  ;;  %4106 = vmatpush3.xpose.msk.msra.mxu1 %vm1085_vm2, %v2221_v61  ;;  %4086 = vmatprep.subr.msk.mxu0 %vm1085_vm2, %v2214_v5  ;;  %v2211_v54 = vld [vmem:[#allocation3 + $0x58] sm:$0xff] }
 0x30c   : > { %v643_v8 = vcombine.low %v589_v59, %v605_v45  ;;  %v644_v9 = vcombine.high %v589_v59, %v605_v45  ;;  %v659_v10 = vcombine.low %v596_v3, %v612_v4  ;;  %v660_v11 = vcombine.high %v596_v3, %v612_v4  ;;  %4087 = vmatpush3.xpose.msk.msra.mxu0 %vm1085_vm2, %v2214_v5 }
 0x30d   : > { %v1063_v6 = vrot.slane %v1055_v1, %v4772_v37  ;;  %v1070_v7 = vrot.slane %v1056_v2, %v4772_v37  ;;  %4098 = vmatprep.subr.msk.mxu0 %vm1085_vm2, %v2219_v12 }
 0x30e   : > { %v651_v19 = vrot.slane %v643_v8, %v4772_v37  ;;  %v658_v20 = vrot.slane %v644_v9, %v4772_v37  ;;  %v667_v21 = vrot.slane %v659_v10, %v4772_v37  ;;  %v674_v22 = vrot.slane %v660_v11, %v4772_v37 }
 0x30f   : > { %v1079_v15 = vcombine.low %v1039_v62, %v1063_v6  ;;  %v1080_v16 = vcombine.high %v1039_v62, %v1063_v6  ;;  %v1081_v17 = vcombine.low %v1046_v63, %v1070_v7  ;;  %v1082_v18 = vcombine.high %v1046_v63, %v1070_v7  ;;  %4089 = vmatmul.mubr.msk.f32.vlgmr.msra.gmra.mxu0 %vm1085_vm2, %v2203_v23  ;;  %v3984_v62 = vld [vmem:[%s4735_s18] sm:$0xff]  }
 0x310   : > { %v3888_v24 = vcombine.low %v651_v19, %v658_v20  ;;  %v3890_v25 = vcombine.high %v651_v19, %v658_v20  ;;  %v3892_v26 = vcombine.low %v667_v21, %v674_v22  ;;  %v3894_v27 = vcombine.high %v667_v21, %v674_v22  ;;  %4099 = vmatpush3.xpose.msk.msra.mxu0 %vm1085_vm2, %v2219_v12 }
 0x311   : > { %1087 = vst.msk [vmem:[#allocation2 + $0x8] sm:$0xff] %vm1085_vm2, %v1079_v15  ;;  %1089 = vst.msk [vmem:[#allocation2 + $0x18] sm:$0xff] %vm1085_vm2, %v1080_v16  ;;  %4102 = vmatprep.mubr.msk.f32.mxu0 %vm1085_vm2, %v2206_v28  ;;  %4100 = vmatprep.subr.msk.mxu0 %vm1085_vm2, %v2218_v29  ;;  %v3986_v63 = vunpack.c.1.s8 %v3984_v62  ;;  %v3990_v1 = vunpack.c.3.s8 %v3984_v62  ;;  %v3985_v2 = vunpack.c.0.s8 %v3984_v62  ;;  %v3989_v4 = vunpack.c.2.s8 %v3984_v62  ;;  %v4162_v15 = vld [vmem:[%s4735_s18 + $0x8] sm:$0xf]   ;;  %s4429_s18 = sshll.u32 %s4533_s17, 4  ;;  %s4430_s18 = int_to_ptr.vmem [resolvable:$false] %s4429_s18 }
 0x312   : > { %1091 = vst.msk [vmem:[#allocation2 + $0x28] sm:$0xff] %vm1085_vm2, %v1081_v17  ;;  %1093 = vst.msk [vmem:[#allocation2 + $0x38] sm:$0xff] %vm1085_vm2, %v1082_v18  ;;  %v2220_v31 = vld [vmem:[#allocation4 + $0x40] sm:$0xff]  ;;  %v857_v32 = vrot.slane %v3888_v24, %v4768_v30  ;;  %v873_v33 = vrot.slane %v3890_v25, %v4768_v30  ;;  %v889_v34 = vrot.slane %v3892_v26, %v4768_v30  ;;  %v2222_v57 = vld [vmem:[#allocation4 + $0x50] sm:$0xff]  ;;  %v3994_v20 = vunpack.c.1.s8 %v4162_v15  ;;  %s4431_s30 = scalar_lea.vmem %s4430_s18, 512  ;;  %p4432_p1 = scmp.lt.s32.totalorder %s5251_s0, %s4430_s18 }
 0x313   : > { %v905_v35 = vrot.slane %v3894_v27, %v4768_v30  ;;  %4107 = vmatprep.subr.msk.mxu1 %vm1085_vm2, %v2220_v31  ;;  %v5043_v0 = vcvt.s32.f32 %v3986_v63  ;;  %v5045_v3 = vcvt.s32.f32 %v3990_v1  ;;  %v5047_v45 = vcvt.s32.f32 %v3985_v2  ;;  %p4433_p0 = scmp.lt.s32.totalorder %s4431_s30, %s4425_s23 }
 0x314   : > { %4108 = vmatpush3.xpose.msk.msra.mxu1 %vm1085_vm2, %v2220_v31  ;;  %v913_v36 = vcombine.low %v857_v32, %v873_v33  ;;  %v914_v38 = vcombine.high %v857_v32, %v873_v33  ;;  %4101 = vmatpush3.xpose.msk.msra.mxu0 %vm1085_vm2, %v2218_v29  ;;  %v5052_v8 = vcvt.s32.f32 %v3989_v4  ;;  %v5063_v27 = vcvt.s32.f32 %v3994_v20  ;;  %v5104_v4 = vpop.permute.xlu1 %571 }
 0x315   : > { %v937_v39 = vcombine.low %v889_v34, %v905_v35  ;;  %v938_v40 = vcombine.high %v889_v34, %v905_v35  ;;  %4112 = vmatprep.subr.msk.mxu0 %vm1085_vm2, %v2223_v41  ;;  %v2766_v5 = vsub.f32 1.0, %v5043_v0  ;;  %v2768_v6 = vsub.f32 1.0, %v5045_v3  ;;  %p4434_p4 = por %p4433_p0, %p4432_p1 }
 0x316   : > { %v921_v43 = vrot.slane %v913_v36, %v4772_v37  ;;  %v928_v46 = vrot.slane %v914_v38, %v4772_v37  ;;  %v2765_v7 = vsub.f32 1.0, %v5047_v45  ;;  %v2767_v12 = vsub.f32 1.0, %v5052_v8 }
 0x317   : > { %v945_v47 = vrot.slane %v937_v39, %v4772_v37  ;;  %v952_v48 = vrot.slane %v938_v40, %v4772_v37  ;;  %4110 = vmatmul.mubr.msk.f32.vlgmr.msra.gmra.mxu1 %vm1085_vm2, %v2209_v42  ;;  %4103 = vmatmul.mubr.msk.f32.vlgmr.msra.gmra.mxu0 %vm1085_vm2, %v2207_v50  ;;  %v2772_v9 = vmul.f32 -1e+30, %v2766_v5  ;;  %v2774_v10 = vmul.f32 -1e+30, %v2768_v6  ;;  %p4435_p6 = pnand %p4434_p4, %p4428_p12 }
 0x318   : > { %v2947_v49 = vld [vmem:[#allocation2 + $0x8] sm:$0xff]  ;;  %4113 = vmatpush3.xpose.msk.msra.mxu0 %vm1085_vm2, %v2223_v41  ;;  %4116 = vmatprep.mubr.msk.f32.mxu0 %vm1085_vm2, %v2210_v56  ;;  %v5039_v61 = vld [vmem:[#allocation2 + $0x18] sm:$0xff]  ;;  %v2771_v11 = vmul.f32 -1e+30, %v2765_v7  ;;  %v2773_v23 = vmul.f32 -1e+30, %v2767_v12  ;;  %v3993_v31 = vunpack.c.0.s8 %v4162_v15 }
 0x319   : > { %4119 = vmatprep.subr.mxu1 %v2947_v49  ;;  %v961_v51 = vcombine.low %v921_v43, %v945_v47  ;;  %v962_v52 = vcombine.high %v921_v43, %v945_v47  ;;  %v963_v53 = vcombine.low %v928_v46, %v952_v48  ;;  %v964_v55 = vcombine.high %v928_v46, %v952_v48  ;;  %v2951_v58 = vld [vmem:[#allocation2 + $0x28] sm:$0xff] }
 0x31a   : > { %4120 = vmatpush3.msra.mxu1 %v2947_v49  ;;  %4114 = vmatprep.subr.msk.mxu0 %vm1085_vm2, %v2222_v57  ;;  %v2770_v33 = vsub.f32 1.0, %v5063_v27  ;;  %v5072_v36 = vcvt.s32.f32 %v3993_v31 }
 0x31b   : > { %1086 = vst.msk [vmem:[#allocation2] sm:$0xff] %vm1085_vm2, %v961_v51  ;;  %1088 = vst.msk [vmem:[#allocation2 + $0x10] sm:$0xff] %vm1085_vm2, %v962_v52 }
 0x31c   : > { %1090 = vst.msk [vmem:[#allocation2 + $0x20] sm:$0xff] %vm1085_vm2, %v963_v53  ;;  %1092 = vst.msk [vmem:[#allocation2 + $0x30] sm:$0xff] %vm1085_vm2, %v964_v55  ;;  %4115 = vmatpush3.xpose.msk.msra.mxu0 %vm1085_vm2, %v2222_v57  ;;  %v2776_v39 = vmul.f32 -1e+30, %v2770_v33  ;;  %v2769_v41 = vsub.f32 1.0, %v5072_v36 }
 0x31d   : > { %4133 = vmatprep.subr.mxu0 %v2951_v58 }
 0x31e   : > { %v2775_v49 = vmul.f32 -1e+30, %v2769_v41 }
 0x31f   : > { %4117 = vmatmul.mubr.msk.f32.vlgmr.msra.gmra.mxu0 %vm1085_vm2, %v2211_v54 }
 0x320   : > { %4134 = vmatpush3.msra.mxu0 %v2951_v58 }
 0x322   : > { %v2946_v59 = vld [vmem:[#allocation2] sm:$0xff] }
 0x323   : > { %v2950_v60 = vld [vmem:[#allocation2 + $0x20] sm:$0xff]  ;;  %4121 = vmatprep.subr.mxu1 %v2946_v59 }
 0x324   : > { %4135 = vmatprep.subr.mxu0 %v2950_v60  ;;  %4122 = vmatpush3.msra.mxu1 %v2946_v59 }
 0x325   : > { %4136 = vmatpush3.msra.mxu0 %v2950_v60  ;;  %4126 = vmatprep.subr.mxu1 %v5039_v61 }
 0x3c6   : > { %v4083_v16 = vpop.f32.mrf.mxu0 }
 0x3c7   : > { %v5056_v17 = vadd.f32 %v4083_v16, %v2772_v9  ;;  %v4097_v18 = vpop.f32.mrf.mxu1 }
 0x3c8   : > { %v2303_v19 = vpop.f32.mrf.mxu0  ;;  %v5058_v21 = vadd.f32 %v4097_v18, %v2774_v10 }
 0x3c9   : > { %v2777_v22 = vadd.f32 %v2771_v11, %v2303_v19  ;;  %v2793_v24 = vsel %vm374_vm0, %v5056_v17, -inf  ;;  %v2477_v25 = vpop.f32.mrf.mxu1 }
 0x3ca   : > { %2794 = vmax.xlane.f32.xlu1 %v2793_v24  ;;  %v5065_v28 = vadd.f32 %v2773_v23, %v2477_v25  ;;  %v2805_v29 = vsel %vm374_vm0, %v5058_v21, -inf }
 0x3cb   : > { %v2790_v26 = vsel %vm374_vm0, %v2777_v22, -inf }
 0x3cc   : > { %2791 = vmax.xlane.f32.xlu0 %v2790_v26  ;;  %v2802_v35 = vsel %vm374_vm0, %v5065_v28, -inf }
 0x3ce   : > { %2806 = vmax.xlane.f32.xlu1 %v2805_v29 }
 0x3cf   : > { %v4090_v32 = vpop.f32.mrf.mxu0 }
 0x3d0   : > { %v2780_v34 = vadd.f32 %v4090_v32, %v2772_v9 }
 0x3d1   : > { %v2390_v40 = vpop.f32.mrf.mxu0 }
 0x3d2   : > { %2803 = vmax.xlane.f32.xlu1 %v2802_v35  ;;  %v2799_v38 = vsel %vm374_vm0, %v2780_v34, -inf  ;;  %v5076_v48 = vadd.f32 %v2771_v11, %v2390_v40 }
 0x3d3   : > { %2800 = vmax.xlane.f32.xlu0 %v2799_v38 }
 0x3d4   : > { %v2796_v55 = vsel %vm374_vm0, %v5076_v48, -inf }
 0x3d7   : > { %v4111_v42 = vpop.f32.mrf.mxu1  ;;  %v4104_v46 = vpop.f32.mrf.mxu0 }
 0x3d8   : > { %v2786_v43 = vadd.f32 %v4111_v42, %v2776_v39  ;;  %v2784_v47 = vadd.f32 %v4104_v46, %v2774_v10  ;;  %v2948_v42 = vld [vmem:[#allocation2 + $0x10] sm:$0xff] }
 0x3d9   : > { %v2651_v51 = vpop.f32.mrf.mxu1  ;;  %v2564_v56 = vpop.f32.mrf.mxu0 }
 0x3da   : > { %v2817_v50 = vsel %vm374_vm0, %v2786_v43, -inf  ;;  %v2811_v52 = vsel %vm374_vm0, %v2784_v47, -inf  ;;  %v5080_v53 = vadd.f32 %v2775_v49, %v2651_v51  ;;  %v5084_v58 = vadd.f32 %v2773_v23, %v2564_v56 }
 0x3db   : > { %2818 = vmax.xlane.f32.xlu1 %v2817_v50  ;;  %2812 = vmax.xlane.f32.xlu0 %v2811_v52 }
 0x3dc   : > { %v2814_v59 = vsel %vm374_vm0, %v5080_v53, -inf  ;;  %v2808_v1 = vsel %vm374_vm0, %v5084_v58, -inf }
 0x3df   : > { %2797 = vmax.xlane.f32.xlu1 %v2796_v55  ;;  %v4118_v57 = vpop.f32.mrf.mxu0 }
 0x3e0   : > { %v5086_v54 = vadd.f32 %v4118_v57, %v2776_v39 }
 0x3e1   : > { %v2738_v60 = vpop.f32.mrf.mxu0 }
 0x3e2   : > { %v5090_v62 = vadd.f32 %v2775_v49, %v2738_v60  ;;  %v2823_v63 = vsel %vm374_vm0, %v5086_v54, -inf  ;;  %v5119_v49 = vld [vmem:[#allocation2 + $0x38] sm:$0xff] }
 0x3e3   : > { %2815 = vmax.xlane.f32.xlu1 %v2814_v59  ;;  %2824 = vmax.xlane.f32.xlu0 %v2823_v63 }
 0x3e4   : > { %v2820_v2 = vsel %vm374_vm0, %v5090_v62, -inf }
 0x3e7   : > { %2809 = vmax.xlane.f32.xlu1 %v2808_v1  ;;  %2821 = vmax.xlane.f32.xlu0 %v2820_v2  ;;  %v747_v2 = vcombine.high %v5104_v4, %v4531_v44 }
 0x3f8   : > { %569 = vrot.lane.b32.xlu1 %v4746_v13, %s4526_s29 }
 0x3fc   : > { %575 = vrot.lane.b32.xlu1 %v4746_v13, %s4527_s7 }
 0x3fd   : > { %577 = vrot.lane.b32.xlu0 %v4748_v14, %s4527_s7 }
 0x453   : > { %v2795_v5 = vpop.xlane.xlu1 %2794 }
 0x454   : > { %v2827_v6 = vsub.f32 %v5056_v17, %v2795_v5 }
 0x455   : > { %v2792_v7 = vpop.xlane.xlu0 %2791 }
 0x456   : > { %v2840_v9 = vmul.f32 1.442695, %v2827_v6  ;;  %v2826_v10 = vsub.f32 %v2777_v22, %v2792_v7 }
 0x457   : > { %v2807_v11 = vpop.xlane.xlu1 %2806 }
 0x458   : > { %4269 = vpow2.f32 %v2840_v9  ;;  %v2838_v12 = vmul.f32 1.442695, %v2826_v10  ;;  %v2831_v15 = vsub.f32 %v5058_v21, %v2807_v11  ;;  %v754_v11 = vrot.slane %v5104_v4, %v4768_v30 }
 0x45a   : > { %4271 = vpow2.f32 %v2838_v12  ;;  %v2848_v16 = vmul.f32 1.442695, %v2831_v15  ;;  %v761_v15 = vrot.slane %v747_v2, %v4768_v30 }
 0x45b   : > { %v2804_v18 = vpop.xlane.xlu1 %2803 }
 0x45c   : > { %4273 = vpow2.f32 %v2848_v16  ;;  %v2830_v13 = vsub.f32 %v5065_v28, %v2804_v18  ;;  %v2801_v14 = vpop.xlane.xlu0 %2800 }
 0x45d   : > { %v2829_v19 = vsub.f32 %v2780_v34, %v2801_v14 }
 0x45e   : > { %v2846_v20 = vmul.f32 1.442695, %v2830_v13 }
 0x45f   : > { %v2844_v23 = vmul.f32 1.442695, %v2829_v19 }
 0x460   : > { %4275 = vpow2.f32 %v2846_v20 }
 0x461   : > { %4277 = vpow2.f32 %v2844_v23 }
 0x464   : > { %v2819_v17 = vpop.xlane.xlu1 %2818  ;;  %v2813_v25 = vpop.xlane.xlu0 %2812 }
 0x465   : > { %v4270_v24 = vpop.eup %4269  ;;  %v2835_v22 = vsub.f32 %v2786_v43, %v2819_v17  ;;  %v2833_v26 = vsub.f32 %v2784_v47, %v2813_v25 }
 0x466   : > { %v2863_v29 = vmul.f32 %v4270_v24, %v5043_v0 }
 0x467   : > { %v4272_v21 = vpop.eup %4271  ;;  %v2856_v31 = vmul.f32 1.442695, %v2835_v22  ;;  %v2852_v32 = vmul.f32 1.442695, %v2833_v26 }
 0x468   : > { %v2798_v33 = vpop.xlane.xlu1 %2797  ;;  %v2877_v35 = vsel %vm374_vm0, %v2863_v29, 0.0  ;;  %v2862_v28 = vmul.f32 %v4272_v21, %v5047_v45 }
 0x469   : > { %v4274_v34 = vpop.eup %4273  ;;  %4279 = vpow2.f32 %v2856_v31  ;;  %v2828_v38 = vsub.f32 %v5076_v48, %v2798_v33  ;;  %2878 = vadd.xlane.f32.xlu1 %v2877_v35 }
 0x46a   : > { %4281 = vpow2.f32 %v2852_v32  ;;  %4123 = vmatprep.mubr.msk.f32.mxu1 %vm374_vm0, %v2862_v28  ;;  %v2867_v39 = vmul.f32 %v4274_v34, %v5045_v3  ;;  %v2874_v56 = vsel %vm374_vm0, %v2862_v28, 0.0 }
 0x46b   : > { %v2842_v40 = vmul.f32 1.442695, %v2828_v38  ;;  %4124 = vmatmul.mubr.msk.f32.vlgmr.msra.gmra.mxu1 %vm374_vm0, %v2863_v29 }
 0x46c   : > { %v2816_v41 = vpop.xlane.xlu1 %2815  ;;  %4127 = vmatpush3.msra.mxu1 %v5039_v61  ;;  %v2889_v43 = vsel %vm374_vm0, %v2867_v39, 0.0  ;;  %v2825_v48 = vpop.xlane.xlu0 %2824 }
 0x46d   : > { %v4276_v46 = vpop.eup %4275  ;;  %4283 = vpow2.f32 %v2842_v40  ;;  %v2834_v47 = vsub.f32 %v5080_v53, %v2816_v41  ;;  %4128 = vmatprep.subr.mxu1 %v2948_v42  ;;  %2890 = vadd.xlane.f32.xlu0 %v2889_v43  ;;  %v2837_v55 = vsub.f32 %v5086_v54, %v2825_v48 }
 0x46e   : > { %4129 = vmatpush3.msra.mxu1 %v2948_v42  ;;  %v2866_v50 = vmul.f32 %v4276_v46, %v5052_v8  ;;  %v4278_v51 = vpop.eup %4277 }
 0x46f   : > { %v2854_v52 = vmul.f32 1.442695, %v2834_v47  ;;  %4140 = vmatprep.subr.mxu1 %v5119_v49  ;;  %v2865_v57 = vmul.f32 %v4278_v51, %v5043_v0  ;;  %v2860_v60 = vmul.f32 1.442695, %v2837_v55 }
 0x470   : > { %v2810_v61 = vpop.xlane.xlu1 %2809  ;;  %4137 = vmatprep.mubr.msk.f32.mxu0 %vm374_vm0, %v2866_v50  ;;  %v2886_v53 = vsel %vm374_vm0, %v2866_v50, 0.0  ;;  %v2822_v63 = vpop.xlane.xlu0 %2821 }
 0x471   : > { %4285 = vpow2.f32 %v2854_v52  ;;  %v2832_v59 = vsub.f32 %v5084_v58, %v2810_v61  ;;  %2875 = vadd.xlane.f32.xlu0 %v2874_v56  ;;  %4138 = vmatmul.mubr.msk.f32.vlgmr.msra.gmra.mxu0 %vm374_vm0, %v2867_v39  ;;  %v2836_v1 = vsub.f32 %v5090_v62, %v2822_v63  ;;  %v2883_v6 = vsel %vm374_vm0, %v2865_v57, 0.0  ;;  %v2952_v56 = vld [vmem:[#allocation2 + $0x30] sm:$0xff] }
 0x472   : > { %2887 = vadd.xlane.f32.xlu1 %v2886_v53 }
 0x473   : > { %v2850_v54 = vmul.f32 1.442695, %v2832_v59  ;;  %v2858_v0 = vmul.f32 1.442695, %v2836_v1 }
 0x474   : > { %v570_v5 = vpop.permute.xlu1 %569  ;;  %v578_v9 = vpop.permute.xlu0 %577 }
 0x475   : > { %4287 = vpow2.f32 %v2850_v54  ;;  %2884 = vadd.xlane.f32.xlu0 %v2883_v6  ;;  %v613_v58 = vcombine.high %v570_v5, %v4531_v44  ;;  %v762_v62 = vcombine.high %v578_v9, %v4531_v44  ;;  %v769_v12 = vrot.slane %v578_v9, %v4768_v30 }
 0x476   : > { %v4280_v7 = vpop.eup %4279  ;;  %4289 = vpow2.f32 %v2860_v60  ;;  %v620_v16 = vrot.slane %v570_v5, %v4768_v30 }
 0x477   : > { %v4282_v10 = vpop.eup %4281  ;;  %4291 = vpow2.f32 %v2858_v0  ;;  %v5142_v13 = vmul.f32 %v4280_v7, %v5063_v27  ;;  %v776_v14 = vrot.slane %v762_v62, %v4768_v30  ;;  %v809_v19 = vcombine.low %v754_v11, %v769_v12 }
 0x478   : > { %v576_v18 = vpop.permute.xlu1 %575  ;;  %v810_v20 = vcombine.high %v754_v11, %v769_v12  ;;  %v627_v17 = vrot.slane %v613_v58, %v4768_v30  ;;  %v5151_v25 = vmul.f32 %v4282_v10, %v5045_v3 }
 0x479   : > { %v628_v23 = vcombine.high %v576_v18, %v4531_v44  ;;  %v635_v24 = vrot.slane %v576_v18, %v4768_v30  ;;  %v2901_v22 = vsel %vm374_vm0, %v5142_v13, 0.0  ;;  %v817_v26 = vrot.slane %v809_v19, %v4772_v37 }
 0x47a   : > { %v4284_v4 = vpop.eup %4283  ;;  %v824_v29 = vrot.slane %v810_v20, %v4772_v37  ;;  %v825_v21 = vcombine.low %v761_v15, %v776_v14  ;;  %v826_v31 = vcombine.high %v761_v15, %v776_v14  ;;  %2902 = vadd.xlane.f32.xlu0 %v2901_v22  ;;  %v2895_v14 = vsel %vm374_vm0, %v5151_v25, 0.0 }
 0x47b   : > { %v642_v32 = vrot.slane %v628_v23, %v4768_v30  ;;  %v675_v33 = vcombine.low %v620_v16, %v635_v24  ;;  %v676_v35 = vcombine.high %v620_v16, %v635_v24  ;;  %v2864_v28 = vmul.f32 %v4284_v4, %v5047_v45 }
 0x47c   : > { %v833_v34 = vrot.slane %v825_v21, %v4772_v37  ;;  %v840_v38 = vrot.slane %v826_v31, %v4772_v37  ;;  %v3897_v39 = vcombine.low %v817_v26, %v824_v29  ;;  %v3899_v3 = vcombine.high %v817_v26, %v824_v29 }
 0x47d   : > { %v683_v41 = vrot.slane %v675_v33, %v4772_v37  ;;  %v690_v42 = vrot.slane %v676_v35, %v4772_v37  ;;  %v691_v43 = vcombine.low %v627_v17, %v642_v32  ;;  %v692_v46 = vcombine.high %v627_v17, %v642_v32  ;;  %4130 = vmatprep.mubr.msk.f32.mxu1 %vm374_vm0, %v2864_v28 }
 0x47e   : > { %v4286_v40 = vpop.eup %4285  ;;  %v982_v47 = vrot.slane %v3897_v39, %v4768_v30  ;;  %v998_v48 = vrot.slane %v3899_v3, %v4768_v30  ;;  %v3901_v45 = vcombine.low %v833_v34, %v840_v38  ;;  %v3903_v50 = vcombine.high %v833_v34, %v840_v38  ;;  %4131 = vmatmul.mubr.msk.f32.vlgmr.msra.gmra.mxu1 %vm374_vm0, %v2865_v57 }
 0x47f   : > { %v699_v51 = vrot.slane %v691_v43, %v4772_v37  ;;  %v706_v52 = vrot.slane %v692_v46, %v4772_v37  ;;  %v3889_v55 = vcombine.low %v683_v41, %v690_v42  ;;  %v3891_v61 = vcombine.high %v683_v41, %v690_v42  ;;  %4141 = vmatpush3.msra.mxu1 %v5119_v49 }
 0x480   : > { %v1014_v53 = vrot.slane %v3901_v45, %v4768_v30  ;;  %v1030_v59 = vrot.slane %v3903_v50, %v4768_v30  ;;  %v1047_v60 = vcombine.low %v982_v47, %v998_v48  ;;  %4142 = vmatprep.subr.mxu1 %v2952_v56  ;;  %v2870_v63 = vmul.f32 %v4286_v40, %v5072_v36 }
 0x481   : > { %v864_v57 = vrot.slane %v3889_v55, %v4768_v30  ;;  %v880_v1 = vrot.slane %v3891_v61, %v4768_v30  ;;  %v3893_v2 = vcombine.low %v699_v51, %v706_v52  ;;  %v3895_v5 = vcombine.high %v699_v51, %v706_v52  ;;  %4143 = vmatpush3.msra.mxu1 %v2952_v56 }
 0x482   : > { %v4288_v54 = vpop.eup %4287  ;;  %v1071_v0 = vcombine.low %v1014_v53, %v1030_v59  ;;  %4151 = vmatprep.mubr.msk.f32.mxu0 %vm374_vm0, %v2870_v63  ;;  %v2880_v49 = vsel %vm374_vm0, %v2864_v28, 0.0  ;;  %v2898_v7 = vsel %vm374_vm0, %v2870_v63, 0.0  ;;  %v1054_v62 = vrot.slane %v1047_v60, %v4772_v37 }
 0x483   : > { %v4290_v6 = vpop.eup %4289  ;;  %v896_v9 = vrot.slane %v3893_v2, %v4768_v30  ;;  %v912_v10 = vrot.slane %v3895_v5, %v4768_v30  ;;  %v929_v11 = vcombine.low %v864_v57, %v880_v1  ;;  %2881 = vadd.xlane.f32.xlu0 %v2880_v49  ;;  %2899 = vadd.xlane.f32.xlu1 %v2898_v7 }
 0x484   : > { %v4292_v58 = vpop.eup %4291  ;;  %v1078_v12 = vrot.slane %v1071_v0, %v4772_v37  ;;  %v2868_v15 = vmul.f32 %v4288_v54, %v5052_v8  ;;  %v2873_v4 = vmul.f32 %v4290_v6, %v5063_v27 }
 0x485   : > { %v2872_v16 = vmul.f32 %v4292_v58, %v5072_v36  ;;  %v953_v18 = vcombine.low %v896_v9, %v912_v10  ;;  %v936_v17 = vrot.slane %v929_v11, %v4772_v37 }
 0x486   : > { %v1083_v19 = vcombine.low %v1054_v62, %v1078_v12  ;;  %v1084_v20 = vcombine.high %v1054_v62, %v1078_v12  ;;  %4144 = vmatprep.mubr.msk.f32.mxu1 %vm374_vm0, %v2868_v15  ;;  %v2892_v23 = vsel %vm374_vm0, %v2868_v15, 0.0  ;;  %v2907_v27 = vsel %vm374_vm0, %v2873_v4, 0.0 }
 0x487   : > { %v960_v24 = vrot.slane %v953_v18, %v4772_v37  ;;  %2896 = vadd.xlane.f32.xlu0 %v2895_v14  ;;  %4145 = vmatmul.mubr.msk.f32.vlgmr.msra.gmra.mxu1 %vm374_vm0, %v5151_v25  ;;  %v2904_v22 = vsel %vm374_vm0, %v2872_v16, 0.0 }
 0x488   : > { %1095 = vst.msk [vmem:[#allocation2 + $0x48] sm:$0xff] %vm1085_vm2, %v1083_v19  ;;  %1097 = vst.msk [vmem:[#allocation2 + $0x58] sm:$0xff] %vm1085_vm2, %v1084_v20  ;;  %2893 = vadd.xlane.f32.xlu1 %v2892_v23  ;;  %4158 = vmatprep.mubr.msk.f32.mxu1 %vm374_vm0, %v2872_v16 }
 0x489   : > { %v965_v8 = vcombine.low %v936_v17, %v960_v24  ;;  %v966_v36 = vcombine.high %v936_v17, %v960_v24 }
 0x48b   : > { %1094 = vst.msk [vmem:[#allocation2 + $0x40] sm:$0xff] %vm1085_vm2, %v965_v8  ;;  %1096 = vst.msk [vmem:[#allocation2 + $0x50] sm:$0xff] %vm1085_vm2, %v966_v36  ;;  %2908 = vadd.xlane.f32.xlu0 %v2907_v27 }
 0x48c   : > { %2905 = vadd.xlane.f32.xlu1 %v2904_v22 }
 0x48f   : > { %v2955_v25 = vld [vmem:[#allocation2 + $0x48] sm:$0xff]  ;;  %v2957_v26 = vld [vmem:[#allocation2 + $0x58] sm:$0xff] }
 0x490   : > { %4147 = vmatprep.subr.mxu0 %v2955_v25  ;;  %4154 = vmatprep.subr.mxu1 %v2957_v26 }
 0x491   : > { %4148 = vmatpush3.msra.mxu0 %v2955_v25  ;;  %4155 = vmatpush3.msra.mxu1 %v2957_v26 }
 0x492   : > { %v2954_v29 = vld [vmem:[#allocation2 + $0x40] sm:$0xff]  ;;  %v2956_v21 = vld [vmem:[#allocation2 + $0x50] sm:$0xff] }
 0x493   : > { %4149 = vmatprep.subr.mxu0 %v2954_v29  ;;  %4156 = vmatprep.subr.mxu1 %v2956_v21 }
 0x494   : > { %4150 = vmatpush3.msra.mxu0 %v2954_v29  ;;  %4157 = vmatpush3.msra.mxu1 %v2956_v21 }
 0x495   : > { %4152 = vmatmul.mubr.msk.f32.vlgmr.msra.gmra.mxu0 %vm374_vm0, %v5142_v13  ;;  %4159 = vmatmul.mubr.msk.f32.vlgmr.msra.gmra.mxu1 %vm374_vm0, %v2873_v4 }
 0x4f2   : > { %v2879_v35 = vpop.xlane.xlu1 %2878 }
 0x4f3   : > { %vm2911_vm3 = vcmp.gt.f32.partialorder %v2879_v35, 0.0 }
 0x4f4   : > { %v2923_v41 = vsel %vm2911_vm3, %v2879_v35, 1.0 }
 0x4f5   : > { %4293 = vrcp.f32 %v2923_v41 }
 0x4f6   : > { %v2891_v31 = vpop.xlane.xlu0 %2890 }
 0x4f7   : > { %vm2915_vm4 = vcmp.gt.f32.partialorder %v2891_v31, 0.0 }
 0x4f8   : > { %v2927_v42 = vsel %vm2915_vm4, %v2891_v31, 1.0 }
 0x4f9   : > { %4295 = vrcp.f32 %v2927_v42 }
 0x4fa   : > { %v2876_v32 = vpop.xlane.xlu0 %2875 }
 0x4fb   : > { %v2888_v34 = vpop.xlane.xlu1 %2887  ;;  %vm2910_vm5 = vcmp.gt.f32.partialorder %v2876_v32, 0.0 }
 0x4fc   : > { %vm2914_vm7 = vcmp.gt.f32.partialorder %v2888_v34, 0.0  ;;  %v2922_v13 = vsel %vm2910_vm5, %v2876_v32, 1.0 }
 0x4fd   : > { %v2926_v47 = vsel %vm2914_vm7, %v2888_v34, 1.0  ;;  %4297 = vrcp.f32 %v2922_v13 }
 0x4fe   : > { %v2885_v33 = vpop.xlane.xlu0 %2884 }
 0x4ff   : > { %vm2913_vm8 = vcmp.gt.f32.partialorder %v2885_v33, 0.0 }
 0x500   : > { %v2925_v45 = vsel %vm2913_vm8, %v2885_v33, 1.0 }
 0x502   : > { %v4294_v54 = vpop.eup %4293 }
 0x503   : > { %v2903_v28 = vpop.xlane.xlu0 %2902 }
 0x504   : > { %vm2919_vm10 = vcmp.gt.f32.partialorder %v2903_v28, 0.0 }
 0x505   : > { %v2931_v52 = vsel %vm2919_vm10, %v2903_v28, 1.0 }
 0x506   : > { %v4296_v2 = vpop.eup %4295 }
 0x50a   : > { %v4298_v5 = vpop.eup %4297 }
 0x50c   : > { %v2882_v38 = vpop.xlane.xlu0 %2881  ;;  %v2900_v39 = vpop.xlane.xlu1 %2899 }
 0x50d   : > { %vm2912_vm11 = vcmp.gt.f32.partialorder %v2882_v38, 0.0  ;;  %vm2918_vm13 = vcmp.gt.f32.partialorder %v2900_v39, 0.0 }
 0x50e   : > { %v2924_v55 = vsel %vm2912_vm11, %v2882_v38, 1.0  ;;  %v2930_v53 = vsel %vm2918_vm13, %v2900_v39, 1.0 }
 0x510   : > { %v2897_v3 = vpop.xlane.xlu0 %2896 }
 0x511   : > { %v2894_v40 = vpop.xlane.xlu1 %2893  ;;  %vm2917_vm6 = vcmp.gt.f32.partialorder %v2897_v3, 0.0 }
 0x512   : > { %v2929_v43 = vsel %vm2917_vm6, %v2897_v3, 1.0  ;;  %vm2916_vm9 = vcmp.gt.f32.partialorder %v2894_v40, 0.0 }
 0x513   : > { %4299 = vrcp.f32 %v2929_v43  ;;  %v2928_v51 = vsel %vm2916_vm9, %v2894_v40, 1.0 }
 0x514   : > { %v2909_v46 = vpop.xlane.xlu0 %2908  ;;  %4301 = vrcp.f32 %v2926_v47 }
 0x515   : > { %v2906_v50 = vpop.xlane.xlu1 %2905  ;;  %vm2921_vm12 = vcmp.gt.f32.partialorder %v2909_v46, 0.0  ;;  %4303 = vrcp.f32 %v2925_v45 }
 0x516   : > { %vm2920_vm14 = vcmp.gt.f32.partialorder %v2906_v50, 0.0  ;;  %4305 = vrcp.f32 %v2928_v51  ;;  %v2933_v56 = vsel %vm2921_vm12, %v2909_v46, 1.0 }
 0x517   : > { %4307 = vrcp.f32 %v2931_v52  ;;  %v2932_v60 = vsel %vm2920_vm14, %v2906_v50, 1.0 }
 0x518   : > { %4309 = vrcp.f32 %v2924_v55 }
 0x519   : > { %4311 = vrcp.f32 %v2933_v56 }
 0x51a   : > { %4313 = vrcp.f32 %v2930_v53 }
 0x51b   : > { %4315 = vrcp.f32 %v2932_v60 }
 0x520   : > { %v4300_v6 = vpop.eup %4299 }
 0x521   : > { %v4302_v0 = vpop.eup %4301 }
 0x522   : > { %v4304_v10 = vpop.eup %4303 }
 0x523   : > { %v4306_v11 = vpop.eup %4305 }
 0x524   : > { %v4308_v15 = vpop.eup %4307 }
 0x525   : > { %v4310_v14 = vpop.eup %4309 }
 0x526   : > { %v4312_v23 = vpop.eup %4311 }
 0x527   : > { %v4314_v36 = vpop.eup %4313 }
 0x528   : > { %v4316_v29 = vpop.eup %4315 }
 0x52b   : > { %v4125_v48 = vpop.f32.mrf.mxu1 }
 0x52c   : > { %v3445_v62 = vmul.f32 %v4294_v54, %v4125_v48 }
 0x52d   : > { %v3030_v61 = vpop.f32.mrf.mxu1 }
 0x52e   : > { %v3444_v4 = vmul.f32 %v4298_v5, %v3030_v61  ;;  %v3461_v22 = vsel %vm1085_vm2, %v3445_v62, 0.0 }
 0x530   : > { %v3456_v40 = vsel %vm1085_vm2, %v3444_v4, 0.0 }
 0x531   : > { %v4139_v57 = vpop.f32.mrf.mxu0 }
 0x532   : > { %v3449_v49 = vmul.f32 %v4296_v2, %v4139_v57 }
 0x533   : > { %v3192_v7 = vpop.f32.mrf.mxu0 }
 0x534   : > { %v3448_v16 = vmul.f32 %v4302_v0, %v3192_v7  ;;  %v3462_v19 = vsel %vm1085_vm2, %v3449_v49, 0.0 }
 0x535   : > { %v3463_v21 = vadd.f32 %v3462_v19, %v3461_v22 }
 0x536   : > { %v3457_v31 = vsel %vm1085_vm2, %v3448_v16, 0.0 }
 0x537   : > { %v3458_v43 = vadd.f32 %v3457_v31, %v3456_v40 }
 0x53e   : > { %v4132_v59 = vpop.f32.mrf.mxu1 }
 0x53f   : > { %v3447_v12 = vmul.f32 %v4304_v10, %v4132_v59 }
 0x540   : > { %v3111_v63 = vpop.f32.mrf.mxu1 }
 0x541   : > { %v3446_v17 = vmul.f32 %v4310_v14, %v3111_v63  ;;  %v3471_v27 = vsel %vm1085_vm2, %v3447_v12, 0.0 }
 0x543   : > { %v3466_v41 = vsel %vm1085_vm2, %v3446_v17, 0.0 }
 0x547   : > { %v4146_v1 = vpop.f32.mrf.mxu1 }
 0x548   : > { %v3451_v58 = vmul.f32 %v4300_v6, %v4146_v1 }
 0x549   : > { %v3273_v9 = vpop.f32.mrf.mxu1 }
 0x54a   : > { %v3450_v18 = vmul.f32 %v4306_v11, %v3273_v9  ;;  %v3472_v20 = vsel %vm1085_vm2, %v3451_v58, 0.0 }
 0x54b   : > { %v3473_v32 = vadd.f32 %v3472_v20, %v3471_v27 }
 0x54c   : > { %v3467_v33 = vsel %vm1085_vm2, %v3450_v18, 0.0 }
 0x54d   : > { %v3468_v46 = vadd.f32 %v3467_v33, %v3466_v41 }
 0x555   : > { %v4153_v24 = vpop.f32.mrf.mxu0  ;;  %v4160_v8 = vpop.f32.mrf.mxu1 }
 0x556   : > { %v3453_v25 = vmul.f32 %v4308_v15, %v4153_v24  ;;  %v3455_v26 = vmul.f32 %v4312_v23, %v4160_v8 }
 0x557   : > { %v3354_v35 = vpop.f32.mrf.mxu0  ;;  %v3435_v28 = vpop.f32.mrf.mxu1 }
 0x558   : > { %v3464_v34 = vsel %vm1085_vm2, %v3453_v25, 0.0  ;;  %v3474_v38 = vsel %vm1085_vm2, %v3455_v26, 0.0  ;;  %v3452_v39 = vmul.f32 %v4314_v36, %v3354_v35  ;;  %v3454_v3 = vmul.f32 %v4316_v29, %v3435_v28 }
 0x559   : > { %v3465_v42 = vadd.f32 %v3464_v34, %v3463_v21  ;;  %v3475_v13 = vadd.f32 %v3474_v38, %v3473_v32 }
 0x55a   : > { %v3459_v47 = vsel %vm1085_vm2, %v3452_v39, 0.0  ;;  %v3469_v48 = vsel %vm1085_vm2, %v3454_v3, 0.0 }
 0x55b   : > { %v3542_v45 = vcombine.high %v3465_v42, %v4531_v44  ;;  %v3549_v50 = vrot.slane %v3465_v42, %v4768_v30  ;;  %v3557_v51 = vcombine.high %v3475_v13, %v4531_v44  ;;  %v3564_v52 = vrot.slane %v3475_v13, %v4768_v30 }
 0x55c   : > { %v3460_v55 = vadd.f32 %v3459_v47, %v3458_v43  ;;  %v3470_v61 = vadd.f32 %v3469_v48, %v3468_v46 }
 0x55d   : > { %v3556_v56 = vrot.slane %v3542_v45, %v4768_v30  ;;  %v3571_v53 = vrot.slane %v3557_v51, %v4768_v30  ;;  %v3572_v59 = vcombine.low %v3549_v50, %v3564_v52  ;;  %v3573_v60 = vcombine.high %v3549_v50, %v3564_v52 }
 0x55e   : > { %v3476_v63 = vcombine.high %v3460_v55, %v4531_v44  ;;  %v3483_v54 = vrot.slane %v3460_v55, %v4768_v30  ;;  %v3491_v57 = vcombine.high %v3470_v61, %v4531_v44  ;;  %v3498_v1 = vrot.slane %v3470_v61, %v4768_v30 }
 0x55f   : > { %v3580_v2 = vrot.slane %v3572_v59, %v4772_v37  ;;  %v3587_v5 = vrot.slane %v3573_v60, %v4772_v37  ;;  %v3588_v6 = vcombine.low %v3556_v56, %v3571_v53  ;;  %v3589_v0 = vcombine.high %v3556_v56, %v3571_v53 }
 0x560   : > { %v3490_v49 = vrot.slane %v3476_v63, %v4768_v30  ;;  %v3505_v7 = vrot.slane %v3491_v57, %v4768_v30  ;;  %v3506_v58 = vcombine.low %v3483_v54, %v3498_v1  ;;  %v3507_v9 = vcombine.high %v3483_v54, %v3498_v1 }
 0x561   : > { %v3596_v10 = vrot.slane %v3588_v6, %v4772_v37  ;;  %v3603_v11 = vrot.slane %v3589_v0, %v4772_v37  ;;  %v3658_v62 = vcombine.low %v3580_v2, %v3587_v5  ;;  %v3974_v44 = vcombine.high %v3580_v2, %v3587_v5 }
 0x562   : > { %v3514_v12 = vrot.slane %v3506_v58, %v4772_v37  ;;  %v3521_v15 = vrot.slane %v3507_v9, %v4772_v37  ;;  %v3522_v16 = vcombine.low %v3490_v49, %v3505_v7  ;;  %v3523_v18 = vcombine.high %v3490_v49, %v3505_v7 }
 0x563   : > { %v3665_v14 = vrot.slane %v3658_v62, %v4768_v30  ;;  %v3673_v19 = vrot.slane %v3974_v44, %v4768_v30  ;;  %v3674_v20 = vcombine.low %v3596_v10, %v3603_v11  ;;  %v3975_v23 = vcombine.high %v3596_v10, %v3603_v11 }
 0x564   : > { %v3530_v4 = vrot.slane %v3522_v16, %v4772_v37  ;;  %v3537_v17 = vrot.slane %v3523_v18, %v4772_v37  ;;  %v3608_v24 = vcombine.low %v3514_v12, %v3521_v15  ;;  %v3972_v8 = vcombine.high %v3514_v12, %v3521_v15 }
 0x565   : > { %v3681_v36 = vrot.slane %v3674_v20, %v4768_v30  ;;  %v3689_v22 = vrot.slane %v3975_v23, %v4768_v30  ;;  %v3690_v27 = vcombine.low %v3665_v14, %v3673_v19 }
 0x566   : > { %v3615_v25 = vrot.slane %v3608_v24, %v4768_v30  ;;  %v3623_v26 = vrot.slane %v3972_v8, %v4768_v30  ;;  %v3624_v29 = vcombine.low %v3530_v4, %v3537_v17  ;;  %v3973_v21 = vcombine.high %v3530_v4, %v3537_v17 }
 0x567   : > { %v3698_v31 = vcombine.low %v3681_v36, %v3689_v22  ;;  %v3697_v28 = vrot.slane %v3690_v27, %v4772_v37 }
 0x568   : > { %v3631_v32 = vrot.slane %v3624_v29, %v4768_v30  ;;  %v3639_v33 = vrot.slane %v3973_v21, %v4768_v30  ;;  %v3640_v35 = vcombine.low %v3615_v25, %v3623_v26 }
 0x569   : > { %v3705_v34 = vrot.slane %v3698_v31, %v4772_v37 }
 0x56a   : > { %v3648_v38 = vcombine.low %v3631_v32, %v3639_v33  ;;  %v3647_v40 = vrot.slane %v3640_v35, %v4772_v37 }
 0x56b   : > { %v3707_v39 = vcombine.high %v3697_v28, %v3705_v34  ;;  %v3706_v3 = vcombine.low %v3697_v28, %v3705_v34 }
 0x56c   : > { %v3655_v41 = vrot.slane %v3648_v38, %v4772_v37 }
 0x56d   : > { %3712 = vrot.lane.b32.xlu0 %v3707_v39, %s4532_s14 }
 0x56e   : > { %v3657_v42 = vcombine.high %v3647_v40, %v3655_v41  ;;  %v3656_v13 = vcombine.low %v3647_v40, %v3655_v41 }
 0x570   : > { %3710 = vrot.lane.b32.xlu1 %v3657_v42, %s4532_s14 }
 0x5df   : > { %v3713_v30 = vpop.permute.xlu0 %3712 }
 0x5e0   : > { %v3717_v43 = vsel %vm1085_vm2, %v3706_v3, %v3713_v30 }
 0x5e1   : > { %3719 = vst.msk [vmem:[%s356_s1 + $0x8] sm:$0xff] %vm374_vm0, %v3717_v43 }
 0x5e2   : > { %v3711_v37 = vpop.permute.xlu1 %3710 }
 0x5e3   : > { %v3716_v46 = vsel %vm1085_vm2, %v3656_v13, %v3711_v37 }
 0x5e4   : > { %3718 = vst.msk [vmem:[%s356_s1] sm:$0xff] %vm374_vm0, %v3716_v46 }
 0x5e5   : > { %4438 = shalt.err (!%p4435_p6)
}
 0x5e6   : > { %s4439_s8 = scalar_lea.hbm %s5257_s11, 256  ;;  %s4443_s27 = scalar_lea.hbm %s5314_s6, 512 }
 0x5e7   : > { %p4440_p10 = scmp.ne.s32.totalorder %s5257_s11, %s4439_s8  ;;  %p4444_p5 = scmp.lt.s32.totalorder %s5257_s11, %s5314_s6 }
 0x5e8   : > { %p4445_p13 = scmp.lt.s32.totalorder %s4443_s27, %s4439_s8 }
 0x5e9   : > { %p4441_p9 = pnand %p4440_p10, %p4622_p8 }
 0x5ea   : > { %p4446_p2 = por %p4445_p13, %p4444_p5 }
 0x5eb   : > { %p4442_p11 = pneg %p4441_p9 }
 0x5ed   : > { %p4447_p3 = pnand %p4446_p2, %p4442_p11 }
 0x5ef   : > { %4450 = shalt.err (!%p4447_p3)
}
 0x5f0   : > { %s4534_s29 = smov 128  }
 0x5f1   : > { %4178 = dma.vmem_to_hbm [thread:$0]  (%p4622_p8), %s5251_s0, 256, %s5257_s11, %s3721_s24, %s4534_s29, %s4534_s29, %s4532_s14  }
 0x5f2 PF: > { %s5342_s7 = sld [smem:[#allocation19_spill]]  ;;  %s3751_s28 = sand.u32 1, %s4493_s21  }
 0x5f3   : > { %p5343_p7 = scmp.ne.s32.totalorder %s5330_s10, 0  ;;  %s3752_s1 = scalar_lea.sflag [#allocation7], %s3751_s28 }
 0x5f8   : > { %p5344_p12 = scmp.ge.s32.totalorder %s5342_s7, 2 }
 0x5fa   : > { %p4195_p1 = pnand %p5344_p12, %p5343_p7 }
 0x5fc   : > { %p4196_p0 = pneg %p4195_p1 }
 0x5fe   : > { %4488 = dma.done.wait (%p4196_p0), %s3752_s1, 256  }
 0x5ff   : > { %4490 = vsyncadd (%p4196_p0), %s3752_s1, 4294967040  ;;  %s26_s26 = sadd.s32 1, %s5342_s7   ;;  %s5345_s9 = sld [smem:[#allocation18_spill]] }
 0x600   : > { %p23_p4 = scmp.ge.s32.totalorder %s26_s26, 4   ;;  %s5346_s23 = sld [smem:[#allocation21_spill]] }
 0x601   : > { %s5347_s13 = sld [smem:[#allocation20_spill]]  ;;  %s5348_s21 = smov %s4497_s22 }
 0x602   : > { %s5350_s24 = smov %s4509_s25 }
 0x603   :  { %25 = sbr.rel (!%p23_p4) target bundleno = 13 (0xd), region = 115 }
 0x605   : > { %s5349_s22 = smov %s5345_s9 }
 0x607   : > { %s5351_s25 = smov %s5347_s13 }
 0x608   :  { %3757 = vsyncpa [#allocation6], 1 }
 0x609   :  { %3759 = vsyncpa [#allocation6 + $0x1], 1 }
 0x60a   :  { %3760 = vsyncpa [#allocation9], 1 }
 0x60b   :  { %3761 = vsyncpa [#allocation12], 1 }
 0x60c   :  { %3763 = vsyncpa [#allocation12 + $0x1], 1 }
 0x60d   :  { %3764 = vsyncpa [#allocation7], 1 }
 0x60e   :  { %3766 = vsyncpa [#allocation7 + $0x1], 1 }

</bundles_post_ra>
